<compile_context>
chip_gen: v7x
topology: tpu7x:2x2x1
jax: 0.10.0
libtpu: 0.0.40
codegen_flags: <defaults>
</compile_context>

<pallas_src>
import functools

import jax
import jax.numpy as jnp
from jax.experimental import pallas as pl
from jax.experimental.pallas import tpu as pltpu


_VMEM_LIMIT_BYTES = 64 * 1024 * 1024   # explicit scoped-VMEM budget (tiles are far below it)


# ---------------------------------------------------------------------------
# Tile-size helpers.  Only exact divisors are returned, so no edge masking is
# needed, and the (8, 128) BlockSpec constraints are always satisfied.
# ---------------------------------------------------------------------------
def _pick_sublane_tile(dim, pref):
    """Largest divisor of dim that is <= pref and a multiple of 8 (or dim itself)."""
    for d in range(min(pref, dim), 0, -1):
        if dim % d == 0 and (d % 8 == 0 or d == dim):
            return d
    return dim


def _pick_lane_tile(dim, pref):
    """Largest divisor of dim that is <= pref and a multiple of 128 (or dim itself)."""
    for d in range(min(pref, dim), 0, -1):
        if dim % d == 0 and (d % 128 == 0 or d == dim):
            return d
    return dim


def _pick_head_group(num_heads, head_dim):
    """Smallest head-group G (dividing H) with G*head_dim a multiple of 128."""
    for g in range(1, num_heads + 1):
        if num_heads % g == 0 and (g * head_dim) % 128 == 0:
            return g
    return num_heads   # fall back: all heads per block -> lane width == embed_dim


# ---------------------------------------------------------------------------
# Kernel 1: fused QKV projection.
#   x (tm, K) ; wq/wk/wv (tn, K) torch layout ; b (3, tn) ; outputs (tm, tn).
# ---------------------------------------------------------------------------
def _qkv_proj_kernel(x_ref, wq_ref, wk_ref, wv_ref, b_ref, q_ref, k_ref, v_ref):
    x = x_ref[...]
    b = b_ref[...].astype(jnp.float32)          # (3, tn): rows = q/k/v bias slices
    dims = (((1,), (1,)), ((), ()))             # contract x dim 1 with w dim 1 (w is (N, K))
    q_ref[...] = (jax.lax.dot_general(x, wq_ref[...], dims,
                                      preferred_element_type=jnp.float32)
                  + b[0:1, :]).astype(q_ref.dtype)
    k_ref[...] = (jax.lax.dot_general(x, wk_ref[...], dims,
                                      preferred_element_type=jnp.float32)
                  + b[1:2, :]).astype(k_ref.dtype)
    v_ref[...] = (jax.lax.dot_general(x, wv_ref[...], dims,
                                      preferred_element_type=jnp.float32)
                  + b[2:3, :]).astype(v_ref.dtype)


def pallas_qkv_proj(x, w_qkv, b_qkv, *, row_block=256, col_block=512):
    M, K = x.shape
    E = K
    assert w_qkv.shape == (3 * E, E)
    tm = _pick_sublane_tile(M, row_block)
    tn = _pick_lane_tile(E, col_block)
    nb = E // tn                                 # block-row offset between q/k/v weights
    b2 = b_qkv.reshape(3, E)                     # free reshape: rows = bq, bk, bv
    out_sds = jax.ShapeDtypeStruct((M, E), x.dtype)
    return pl.pallas_call(
        _qkv_proj_kernel,
        out_shape=(out_sds, out_sds, out_sds),
        grid=(M // tm, E // tn),
        in_specs=[
            pl.BlockSpec((tm, K), lambda i, j: (i, 0)),
            pl.BlockSpec((tn, K), lambda i, j: (j, 0)),            # q rows of (3E, E)
            pl.BlockSpec((tn, K), lambda i, j: (nb + j, 0)),       # k rows
            pl.BlockSpec((tn, K), lambda i, j: (2 * nb + j, 0)),   # v rows
            pl.BlockSpec((3, tn), lambda i, j: (0, j)),
        ],
        out_specs=(
            pl.BlockSpec((tm, tn), lambda i, j: (i, j)),
            pl.BlockSpec((tm, tn), lambda i, j: (i, j)),
            pl.BlockSpec((tm, tn), lambda i, j: (i, j)),
        ),
        compiler_params=pltpu.CompilerParams(
            dimension_semantics=("parallel", "parallel"),
            vmem_limit_bytes=_VMEM_LIMIT_BYTES),
    )(x, w_qkv, w_qkv, w_qkv, b2)


# ---------------------------------------------------------------------------
# Kernel 2: tiled linear (output projection).  y = x @ w^T + b, w torch layout.
# ---------------------------------------------------------------------------
def _linear_kernel(x_ref, w_ref, b_ref, o_ref):
    acc = jax.lax.dot_general(x_ref[...], w_ref[...], (((1,), (1,)), ((), ())),
                              preferred_element_type=jnp.float32)
    o_ref[...] = (acc + b_ref[...].astype(jnp.float32)).astype(o_ref.dtype)


def pallas_linear(x, w, b, *, row_block=256, col_block=512):
    M, K = x.shape
    N = w.shape[0]                               # torch layout (N, K)
    tm = _pick_sublane_tile(M, row_block)
    tn = _pick_lane_tile(N, col_block)
    return pl.pallas_call(
        _linear_kernel,
        out_shape=jax.ShapeDtypeStruct((M, N), x.dtype),
        grid=(M // tm, N // tn),
        in_specs=[
            pl.BlockSpec((tm, K), lambda i, j: (i, 0)),
            pl.BlockSpec((tn, K), lambda i, j: (j, 0)),
            pl.BlockSpec((1, tn), lambda i, j: (0, j)),
        ],
        out_specs=pl.BlockSpec((tm, tn), lambda i, j: (i, j)),
        compiler_params=pltpu.CompilerParams(
            dimension_semantics=("parallel", "parallel"),
            vmem_limit_bytes=_VMEM_LIMIT_BYTES),
    )(x, w, b.reshape(1, N))


# ---------------------------------------------------------------------------
# Kernel 3: flash attention (online softmax), G heads per grid step.
#   q/k/v blocks (1, tq|tk, G*Hd) read straight out of (B, T, E) arrays;
#   output written merged-head, lane-dense into (B, T, E).
# ---------------------------------------------------------------------------
def _flash_attn_kernel(q_ref, k_ref, v_ref, o_ref, m_ref, l_ref, acc_ref, *,
                       scale, heads_per_block, head_dim):
    ki = pl.program_id(3)

    @pl.when(ki == 0)
    def _init():
        m_ref[...] = jnp.full(m_ref.shape, -jnp.inf, m_ref.dtype)
        l_ref[...] = jnp.zeros(l_ref.shape, l_ref.dtype)
        acc_ref[...] = jnp.zeros(acc_ref.shape, acc_ref.dtype)

    q = q_ref[0] * scale                 # (tq, G*Hd): scale q, not the (tq,tk) scores
    k = k_ref[0]                         # (tk, G*Hd)
    v = v_ref[0]                         # (tk, G*Hd)

    for g in range(heads_per_block):     # statically unrolled; G is small
        lo = g * head_dim
        hi = lo + head_dim
        qg = q[:, lo:hi]
        kg = k[:, lo:hi]
        vg = v[:, lo:hi]
        # scores: (tq, tk), f32 accumulation on the MXU
        s = jax.lax.dot_general(qg, kg, (((1,), (1,)), ((), ())),
                                preferred_element_type=jnp.float32)
        m_prev = m_ref[g]                                                # (tq, 1)
        m_new = jnp.maximum(m_prev, jnp.max(s, axis=-1, keepdims=True))
        alpha = jnp.exp(m_prev - m_new)
        p = jnp.exp(s - m_new)                                           # f32 softmax math
        l_ref[g] = alpha * l_ref[g] + jnp.sum(p, axis=-1, keepdims=True)
        acc_ref[g] = alpha * acc_ref[g] + jax.lax.dot_general(
            p.astype(vg.dtype), vg, (((1,), (0,)), ((), ())),
            preferred_element_type=jnp.float32)
        m_ref[g] = m_new

    @pl.when(ki == pl.num_programs(3) - 1)
    def _finalize():
        for g in range(heads_per_block):
            lo = g * head_dim
            inv_l = pl.reciprocal(l_ref[g], approx=True)                 # EUP slot
            o_ref[0, :, lo:lo + head_dim] = (acc_ref[g] * inv_l).astype(o_ref.dtype)


def pallas_flash_mha(q, k, v, num_heads, *, q_block=256, kv_block=256):
    B, T, E = q.shape
    H = num_heads
    Hd = E // H
    G = _pick_head_group(H, Hd)          # heads per grid step (lane width G*Hd)
    GHd = G * Hd
    tq = _pick_sublane_tile(T, q_block)
    tk = _pick_sublane_tile(T, kv_block)
    scale = 1.0 / float(Hd) ** 0.5
    kernel = functools.partial(_flash_attn_kernel, scale=scale,
                               heads_per_block=G, head_dim=Hd)
    return pl.pallas_call(
        kernel,
        out_shape=jax.ShapeDtypeStruct((B, T, E), q.dtype),
        grid=(B, H // G, T // tq, T // tk),
        in_specs=[
            pl.BlockSpec((1, tq, GHd), lambda b, g, qi, ki: (b, qi, g)),
            pl.BlockSpec((1, tk, GHd), lambda b, g, qi, ki: (b, ki, g)),
            pl.BlockSpec((1, tk, GHd), lambda b, g, qi, ki: (b, ki, g)),
        ],
        out_specs=pl.BlockSpec((1, tq, GHd), lambda b, g, qi, ki: (b, qi, g)),
        scratch_shapes=[
            pltpu.VMEM((G, tq, 1), jnp.float32),    # running max m
            pltpu.VMEM((G, tq, 1), jnp.float32),    # running denom l
            pltpu.VMEM((G, tq, Hd), jnp.float32),   # running numerator acc
        ],
        compiler_params=pltpu.CompilerParams(
            dimension_semantics=("parallel", "parallel", "parallel", "arbitrary"),
            vmem_limit_bytes=_VMEM_LIMIT_BYTES),
    )(q, k, v)


# ---------------------------------------------------------------------------
# Full forward: mirrors PlainMultiHeadAttention.forward (batch_first=False,
# qkv computed from `query` only).  Returns (attn_output, None).
# ---------------------------------------------------------------------------
def plain_mha_forward(query, params, num_heads, compute_dtype=None, *,
                      proj_row_block=256, proj_col_block=512,
                      attn_q_block=256, attn_kv_block=256):
    T, B, E = query.shape
    assert E % num_heads == 0, "embed_dim must be divisible by num_heads"
    assert E % 8 == 0, "embed_dim must be a multiple of 8 for TPU tiling"
    out_dtype = query.dtype

    if compute_dtype is not None:        # e.g. jnp.bfloat16 -> bf16 MXU, f32 accumulation
        query = query.astype(compute_dtype)
        params = jax.tree_util.tree_map(lambda t: t.astype(compute_dtype), params)

    w_qkv, b_qkv = params["qkv_w"], params["qkv_b"]       # (3E, E), (3E,) torch layout
    w_proj, b_proj = params["proj_w"], params["proj_b"]   # (E, E),  (E,)

    # (T, B, E) -> (B, T, E) -> (B*T, E).  Batch-major rows let the attention
    # kernel slice heads / write merged heads directly via index_maps.
    x = jnp.transpose(query, (1, 0, 2)).reshape(B * T, E)

    q2d, k2d, v2d = pallas_qkv_proj(x, w_qkv, b_qkv,
                                    row_block=proj_row_block, col_block=proj_col_block)
    qb = q2d.reshape(B, T, E)            # free reshapes (rows are already b-major)
    kb = k2d.reshape(B, T, E)
    vb = v2d.reshape(B, T, E)

    attn = pallas_flash_mha(qb, kb, vb, num_heads,
                            q_block=attn_q_block, kv_block=attn_kv_block)  # (B, T, E)

    out2d = pallas_linear(attn.reshape(B * T, E), w_proj, b_proj,
                          row_block=proj_row_block, col_block=proj_col_block)
    out = jnp.transpose(out2d.reshape(B, T, E), (1, 0, 2)).astype(out_dtype)  # (T, B, E)
    return out, None


# ---------------------------------------------------------------------------
# Pure-JAX reference for correctness checking.
# ---------------------------------------------------------------------------
def reference_forward(query, params, num_heads):
    T, B, E = query.shape
    H = num_heads
    Hd = E // H
    qkv = query @ params["qkv_w"].T + params["qkv_b"]
    q, k, v = qkv[..., :E], qkv[..., E:2 * E], qkv[..., 2 * E:]

    def split_heads(t):
        return t.reshape(T, B, H, Hd).transpose(1, 2, 0, 3)   # (B, H, T, Hd)

    qh, kh, vh = split_heads(q), split_heads(k), split_heads(v)
    scale = 1.0 / float(Hd) ** 0.5
    s = jnp.einsum("bhqd,bhkd->bhqk", qh, kh) * scale
    p = jax.nn.softmax(s, axis=-1)
    attn = jnp.einsum("bhqk,bhkd->bhqd", p, vh)               # (B, H, T, Hd)
    attn = attn.transpose(2, 0, 1, 3).reshape(T * B, E)
    out = attn @ params["proj_w"].T + params["proj_b"]
    return out.reshape(T, B, E)


if __name__ == "__main__":
    # Small shapes consistent with the module: tgt_len=32, bsz=2, embed=32, heads=4.
    T, B, E, H = 32, 2, 32, 4

    key = jax.random.PRNGKey(0)
    k_q, k_w1, k_b1, k_w2, k_b2 = jax.random.split(key, 5)

    query = jax.random.normal(k_q, (T, B, E), dtype=jnp.float32)
    params = {
        "qkv_w": jax.random.normal(k_w1, (3 * E, E), dtype=jnp.float32) * 0.05,
        "qkv_b": jax.random.normal(k_b1, (3 * E,), dtype=jnp.float32) * 0.05,
        "proj_w": jax.random.normal(k_w2, (E, E), dtype=jnp.float32) * 0.05,
        "proj_b": jax.random.normal(k_b2, (E,), dtype=jnp.float32) * 0.05,
    }

    ref = reference_forward(query, params, num_heads=H)

    # 1) f32, small blocks forced so the multi-tile / multi-KV-step online-softmax
    #    path of the flash kernel and the tiled linears are actually exercised.
    fwd = jax.jit(functools.partial(
        plain_mha_forward, num_heads=H,
        proj_row_block=16, proj_col_block=32,
        attn_q_block=8, attn_kv_block=8))
    out, _ = fwd(query, params)
    out = jax.block_until_ready(out)
    assert out.shape == (T, B, E), out.shape
    assert jnp.allclose(out, ref, atol=2e-3, rtol=1e-2), float(jnp.max(jnp.abs(out - ref)))

    # 2) bf16 compute-dtype smoke run (bf16 MXU operands, f32 accumulation),
    #    default (performance) block sizes.
    out_bf16, _ = plain_mha_forward(query, params, num_heads=H,
                                    compute_dtype=jnp.bfloat16)
    out_bf16 = jax.block_until_ready(out_bf16)
    assert out_bf16.shape == (T, B, E), out_bf16.shape
    assert jnp.allclose(out_bf16.astype(jnp.float32), ref, atol=5e-2, rtol=5e-2)

    print("KERNEL_OK")
</pallas_src>

<mosaic_0001>
module attributes {stable_mosaic.version = 11 : i64} {
  func.func @_qkv_proj_kernel(%arg0: i32, %arg1: i32, %arg2: memref<16x32xf32, #tpu.memory_space<vmem>>, %arg3: memref<32x32xf32, #tpu.memory_space<vmem>>, %arg4: memref<32x32xf32, #tpu.memory_space<vmem>>, %arg5: memref<32x32xf32, #tpu.memory_space<vmem>>, %arg6: memref<3x32xf32, #tpu.memory_space<vmem>>, %arg7: memref<16x32xf32, #tpu.memory_space<vmem>>, %arg8: memref<16x32xf32, #tpu.memory_space<vmem>>, %arg9: memref<16x32xf32, #tpu.memory_space<vmem>>) attributes {dimension_semantics = [#tpu.dimension_semantics<parallel>, #tpu.dimension_semantics<parallel>], iteration_bounds = array<i64: 4, 1>, scalar_prefetch = 0 : i64, scratch_operands = 0 : i64, tpu.core_type = #tpu.core_type<tc>, window_params = [{transform_indices = @transform_0, window_bounds = array<i64: 16, 32>}, {transform_indices = @transform_1, window_bounds = array<i64: 32, 32>}, {transform_indices = @transform_2, window_bounds = array<i64: 32, 32>}, {transform_indices = @transform_3, window_bounds = array<i64: 32, 32>}, {transform_indices = @transform_4, window_bounds = array<i64: 3, 32>}, {transform_indices = @transform_5, window_bounds = array<i64: 16, 32>}, {transform_indices = @transform_6, window_bounds = array<i64: 16, 32>}, {transform_indices = @transform_7, window_bounds = array<i64: 16, 32>}]} {
    %c0 = arith.constant 0 : index
    %c0_0 = arith.constant 0 : index
    %0 = vector.load %arg2[%c0, %c0_0] : memref<16x32xf32, #tpu.memory_space<vmem>>, vector<16x32xf32>
    %c0_1 = arith.constant 0 : index
    %c0_2 = arith.constant 0 : index
    %1 = vector.load %arg6[%c0_1, %c0_2] : memref<3x32xf32, #tpu.memory_space<vmem>>, vector<3x32xf32>
    %c0_3 = arith.constant 0 : index
    %c0_4 = arith.constant 0 : index
    %2 = vector.load %arg3[%c0_3, %c0_4] : memref<32x32xf32, #tpu.memory_space<vmem>>, vector<32x32xf32>
    %cst = arith.constant dense<0.000000e+00> : vector<16x32xf32>
    %3 = tpu.matmul %0, %2, %cst {dimension_numbers = #tpu.dot_dimension_numbers<[1], [1], [0], [0], [0, 0, 1, 0], [], []>} : vector<16x32xf32>, vector<32x32xf32>, vector<16x32xf32> -> vector<16x32xf32>
    %4 = vector.extract_strided_slice %1 {offsets = [0, 0], sizes = [1, 32], strides = [1, 1]} : vector<3x32xf32> to vector<1x32xf32>
    %5 = vector.broadcast %4 : vector<1x32xf32> to vector<16x32xf32>
    %6 = arith.addf %3, %5 : vector<16x32xf32>
    %c0_5 = arith.constant 0 : index
    %c0_6 = arith.constant 0 : index
    %7 = vector.load %arg7[%c0_5, %c0_6] : memref<16x32xf32, #tpu.memory_space<vmem>>, vector<16x32xf32>
    tpu.vector_store %arg7[%c0_5, %c0_6], %6 {strides = array<i32>} : memref<16x32xf32, #tpu.memory_space<vmem>>, vector<16x32xf32>,
    %c0_7 = arith.constant 0 : index
    %c0_8 = arith.constant 0 : index
    %8 = vector.load %arg4[%c0_7, %c0_8] : memref<32x32xf32, #tpu.memory_space<vmem>>, vector<32x32xf32>
    %cst_9 = arith.constant dense<0.000000e+00> : vector<16x32xf32>
    %9 = tpu.matmul %0, %8, %cst_9 {dimension_numbers = #tpu.dot_dimension_numbers<[1], [1], [0], [0], [0, 0, 1, 0], [], []>} : vector<16x32xf32>, vector<32x32xf32>, vector<16x32xf32> -> vector<16x32xf32>
    %10 = vector.extract_strided_slice %1 {offsets = [1, 0], sizes = [1, 32], strides = [1, 1]} : vector<3x32xf32> to vector<1x32xf32>
    %11 = vector.broadcast %10 : vector<1x32xf32> to vector<16x32xf32>
    %12 = arith.addf %9, %11 : vector<16x32xf32>
    %c0_10 = arith.constant 0 : index
    %c0_11 = arith.constant 0 : index
    %13 = vector.load %arg8[%c0_10, %c0_11] : memref<16x32xf32, #tpu.memory_space<vmem>>, vector<16x32xf32>
    tpu.vector_store %arg8[%c0_10, %c0_11], %12 {strides = array<i32>} : memref<16x32xf32, #tpu.memory_space<vmem>>, vector<16x32xf32>,
    %c0_12 = arith.constant 0 : index
    %c0_13 = arith.constant 0 : index
    %14 = vector.load %arg5[%c0_12, %c0_13] : memref<32x32xf32, #tpu.memory_space<vmem>>, vector<32x32xf32>
    %cst_14 = arith.constant dense<0.000000e+00> : vector<16x32xf32>
    %15 = tpu.matmul %0, %14, %cst_14 {dimension_numbers = #tpu.dot_dimension_numbers<[1], [1], [0], [0], [0, 0, 1, 0], [], []>} : vector<16x32xf32>, vector<32x32xf32>, vector<16x32xf32> -> vector<16x32xf32>
    %16 = vector.extract_strided_slice %1 {offsets = [2, 0], sizes = [1, 32], strides = [1, 1]} : vector<3x32xf32> to vector<1x32xf32>
    %17 = vector.broadcast %16 : vector<1x32xf32> to vector<16x32xf32>
    %18 = arith.addf %15, %17 : vector<16x32xf32>
    %c0_15 = arith.constant 0 : index
    %c0_16 = arith.constant 0 : index
    %19 = vector.load %arg9[%c0_15, %c0_16] : memref<16x32xf32, #tpu.memory_space<vmem>>, vector<16x32xf32>
    tpu.vector_store %arg9[%c0_15, %c0_16], %18 {strides = array<i32>} : memref<16x32xf32, #tpu.memory_space<vmem>>, vector<16x32xf32>,
    return
  }
  func.func @transform_0(%arg0: i32, %arg1: i32) -> (i32, i32) {
    %c0_i32 = arith.constant 0 : i32
    %c0_i32_0 = arith.constant 0 : i32
    return %arg0, %c0_i32 : i32, i32
  }
  func.func @transform_1(%arg0: i32, %arg1: i32) -> (i32, i32) {
    %c0_i32 = arith.constant 0 : i32
    %c0_i32_0 = arith.constant 0 : i32
    return %arg1, %c0_i32 : i32, i32
  }
  func.func @transform_2(%arg0: i32, %arg1: i32) -> (i32, i32) {
    %c1_i32 = arith.constant 1 : i32
    %0 = arith.addi %c1_i32, %arg1 : i32
    %c0_i32 = arith.constant 0 : i32
    %c0_i32_0 = arith.constant 0 : i32
    return %0, %c0_i32 : i32, i32
  }
  func.func @transform_3(%arg0: i32, %arg1: i32) -> (i32, i32) {
    %c2_i32 = arith.constant 2 : i32
    %0 = arith.addi %c2_i32, %arg1 : i32
    %c0_i32 = arith.constant 0 : i32
    %c0_i32_0 = arith.constant 0 : i32
    return %0, %c0_i32 : i32, i32
  }
  func.func @transform_4(%arg0: i32, %arg1: i32) -> (i32, i32) {
    %c0_i32 = arith.constant 0 : i32
    %c0_i32_0 = arith.constant 0 : i32
    return %c0_i32, %arg1 : i32, i32
  }
  func.func @transform_5(%arg0: i32, %arg1: i32) -> (i32, i32) {
    %c0_i32 = arith.constant 0 : i32
    return %arg0, %arg1 : i32, i32
  }
  func.func @transform_6(%arg0: i32, %arg1: i32) -> (i32, i32) {
    %c0_i32 = arith.constant 0 : i32
    return %arg0, %arg1 : i32, i32
  }
  func.func @transform_7(%arg0: i32, %arg1: i32) -> (i32, i32) {
    %c0_i32 = arith.constant 0 : i32
    return %arg0, %arg1 : i32, i32
  }
}

module attributes {stable_mosaic.version = 11 : i64} {
  func.func @_linear_kernel(%arg0: i32, %arg1: i32, %arg2: memref<16x32xf32, #tpu.memory_space<vmem>>, %arg3: memref<32x32xf32, #tpu.memory_space<vmem>>, %arg4: memref<1x32xf32, #tpu.memory_space<vmem>>, %arg5: memref<16x32xf32, #tpu.memory_space<vmem>>) attributes {dimension_semantics = [#tpu.dimension_semantics<parallel>, #tpu.dimension_semantics<parallel>], iteration_bounds = array<i64: 4, 1>, scalar_prefetch = 0 : i64, scratch_operands = 0 : i64, tpu.core_type = #tpu.core_type<tc>, window_params = [{transform_indices = @transform_0, window_bounds = array<i64: 16, 32>}, {transform_indices = @transform_1, window_bounds = array<i64: 32, 32>}, {transform_indices = @transform_2, window_bounds = array<i64: 1, 32>}, {transform_indices = @transform_3, window_bounds = array<i64: 16, 32>}]} {
    %c0 = arith.constant 0 : index
    %c0_0 = arith.constant 0 : index
    %0 = vector.load %arg2[%c0, %c0_0] : memref<16x32xf32, #tpu.memory_space<vmem>>, vector<16x32xf32>
    %c0_1 = arith.constant 0 : index
    %c0_2 = arith.constant 0 : index
    %1 = vector.load %arg3[%c0_1, %c0_2] : memref<32x32xf32, #tpu.memory_space<vmem>>, vector<32x32xf32>
    %cst = arith.constant dense<0.000000e+00> : vector<16x32xf32>
    %2 = tpu.matmul %0, %1, %cst {dimension_numbers = #tpu.dot_dimension_numbers<[1], [1], [0], [0], [0, 0, 1, 0], [], []>} : vector<16x32xf32>, vector<32x32xf32>, vector<16x32xf32> -> vector<16x32xf32>
    %c0_3 = arith.constant 0 : index
    %c0_4 = arith.constant 0 : index
    %3 = vector.load %arg4[%c0_3, %c0_4] : memref<1x32xf32, #tpu.memory_space<vmem>>, vector<1x32xf32>
    %4 = vector.broadcast %3 : vector<1x32xf32> to vector<16x32xf32>
    %5 = arith.addf %2, %4 : vector<16x32xf32>
    %c0_5 = arith.constant 0 : index
    %c0_6 = arith.constant 0 : index
    %6 = vector.load %arg5[%c0_5, %c0_6] : memref<16x32xf32, #tpu.memory_space<vmem>>, vector<16x32xf32>
    tpu.vector_store %arg5[%c0_5, %c0_6], %5 {strides = array<i32>} : memref<16x32xf32, #tpu.memory_space<vmem>>, vector<16x32xf32>,
    return
  }
  func.func @transform_0(%arg0: i32, %arg1: i32) -> (i32, i32) {
    %c0_i32 = arith.constant 0 : i32
    %c0_i32_0 = arith.constant 0 : i32
    return %arg0, %c0_i32 : i32, i32
  }
  func.func @transform_1(%arg0: i32, %arg1: i32) -> (i32, i32) {
    %c0_i32 = arith.constant 0 : i32
    %c0_i32_0 = arith.constant 0 : i32
    return %arg1, %c0_i32 : i32, i32
  }
  func.func @transform_2(%arg0: i32, %arg1: i32) -> (i32, i32) {
    %c0_i32 = arith.constant 0 : i32
    %c0_i32_0 = arith.constant 0 : i32
    return %c0_i32, %arg1 : i32, i32
  }
  func.func @transform_3(%arg0: i32, %arg1: i32) -> (i32, i32) {
    %c0_i32 = arith.constant 0 : i32
    return %arg0, %arg1 : i32, i32
  }
}

module attributes {stable_mosaic.version = 11 : i64} {
  func.func @_flash_attn_kernel(%arg0: i32, %arg1: i32, %arg2: i32, %arg3: i32, %arg4: memref<1x8x32xf32, #tpu.memory_space<vmem>>, %arg5: memref<1x8x32xf32, #tpu.memory_space<vmem>>, %arg6: memref<1x8x32xf32, #tpu.memory_space<vmem>>, %arg7: memref<1x8x32xf32, #tpu.memory_space<vmem>>, %arg8: memref<4x8x1xf32, #tpu.memory_space<vmem>>, %arg9: memref<4x8x1xf32, #tpu.memory_space<vmem>>, %arg10: memref<4x8x8xf32, #tpu.memory_space<vmem>>) attributes {dimension_semantics = [#tpu.dimension_semantics<parallel>, #tpu.dimension_semantics<parallel>, #tpu.dimension_semantics<parallel>, #tpu.dimension_semantics<arbitrary>], iteration_bounds = array<i64: 2, 1, 4, 4>, scalar_prefetch = 0 : i64, scratch_operands = 3 : i64, tpu.core_type = #tpu.core_type<tc>, window_params = [{transform_indices = @transform_0, window_bounds = array<i64: 1, 8, 32>}, {transform_indices = @transform_1, window_bounds = array<i64: 1, 8, 32>}, {transform_indices = @transform_2, window_bounds = array<i64: 1, 8, 32>}, {transform_indices = @transform_3, window_bounds = array<i64: 1, 8, 32>}]} {
    %c0_i32 = arith.constant 0 : i32
    %0 = arith.cmpi eq, %arg3, %c0_i32 : i32
    %1 = arith.extui %0 : i1 to i32
    %c0_i32_0 = arith.constant 0 : i32
    %2 = arith.cmpi ne, %1, %c0_i32_0 : i32
    scf.if %2 {
      %cst_95 = arith.constant 0xFF800000 : f32
      %154 = vector.broadcast %cst_95 : f32 to vector<4x8x1xf32>
      %c0_96 = arith.constant 0 : index
      %c0_97 = arith.constant 0 : index
      %c0_98 = arith.constant 0 : index
      %155 = vector.load %arg8[%c0_96, %c0_97, %c0_98] : memref<4x8x1xf32, #tpu.memory_space<vmem>>, vector<4x8x1xf32>
      tpu.vector_store %arg8[%c0_96, %c0_97, %c0_98], %154 {strides = array<i32>} : memref<4x8x1xf32, #tpu.memory_space<vmem>>, vector<4x8x1xf32>,
      %cst_99 = arith.constant 0.000000e+00 : f32
      %156 = vector.broadcast %cst_99 : f32 to vector<4x8x1xf32>
      %c0_100 = arith.constant 0 : index
      %c0_101 = arith.constant 0 : index
      %c0_102 = arith.constant 0 : index
      %157 = vector.load %arg9[%c0_100, %c0_101, %c0_102] : memref<4x8x1xf32, #tpu.memory_space<vmem>>, vector<4x8x1xf32>
      tpu.vector_store %arg9[%c0_100, %c0_101, %c0_102], %156 {strides = array<i32>} : memref<4x8x1xf32, #tpu.memory_space<vmem>>, vector<4x8x1xf32>,
      %cst_103 = arith.constant 0.000000e+00 : f32
      %158 = vector.broadcast %cst_103 : f32 to vector<4x8x8xf32>
      %c0_104 = arith.constant 0 : index
      %c0_105 = arith.constant 0 : index
      %c0_106 = arith.constant 0 : index
      %159 = vector.load %arg10[%c0_104, %c0_105, %c0_106] : memref<4x8x8xf32, #tpu.memory_space<vmem>>, vector<4x8x8xf32>
      tpu.vector_store %arg10[%c0_104, %c0_105, %c0_106], %158 {strides = array<i32>} : memref<4x8x8xf32, #tpu.memory_space<vmem>>, vector<4x8x8xf32>,
    } else {
    }
    %c0 = arith.constant 0 : index
    %c0_1 = arith.constant 0 : index
    %c0_2 = arith.constant 0 : index
    %3 = vector.load %arg4[%c0, %c0_1, %c0_2] : memref<1x8x32xf32, #tpu.memory_space<vmem>>, vector<1x8x32xf32>
    %4 = vector.shape_cast %3 : vector<1x8x32xf32> to vector<8x32xf32>
    %cst = arith.constant 0.353553385 : f32
    %5 = vector.broadcast %cst : f32 to vector<8x32xf32>
    %6 = arith.mulf %4, %5 : vector<8x32xf32>
    %c0_3 = arith.constant 0 : index
    %c0_4 = arith.constant 0 : index
    %c0_5 = arith.constant 0 : index
    %7 = vector.load %arg5[%c0_3, %c0_4, %c0_5] : memref<1x8x32xf32, #tpu.memory_space<vmem>>, vector<1x8x32xf32>
    %8 = vector.shape_cast %7 : vector<1x8x32xf32> to vector<8x32xf32>
    %c0_6 = arith.constant 0 : index
    %c0_7 = arith.constant 0 : index
    %c0_8 = arith.constant 0 : index
    %9 = vector.load %arg6[%c0_6, %c0_7, %c0_8] : memref<1x8x32xf32, #tpu.memory_space<vmem>>, vector<1x8x32xf32>
    %10 = vector.shape_cast %9 : vector<1x8x32xf32> to vector<8x32xf32>
    %11 = vector.extract_strided_slice %6 {offsets = [0, 0], sizes = [8, 8], strides = [1, 1]} : vector<8x32xf32> to vector<8x8xf32>
    %12 = vector.extract_strided_slice %8 {offsets = [0, 0], sizes = [8, 8], strides = [1, 1]} : vector<8x32xf32> to vector<8x8xf32>
    %13 = vector.extract_strided_slice %10 {offsets = [0, 0], sizes = [8, 8], strides = [1, 1]} : vector<8x32xf32> to vector<8x8xf32>
    %cst_9 = arith.constant dense<0.000000e+00> : vector<8x8xf32>
    %14 = tpu.matmul %11, %12, %cst_9 {dimension_numbers = #tpu.dot_dimension_numbers<[1], [1], [0], [0], [0, 0, 1, 0], [], []>} : vector<8x8xf32>, vector<8x8xf32>, vector<8x8xf32> -> vector<8x8xf32>
    %c0_10 = arith.constant 0 : index
    %c0_11 = arith.constant 0 : index
    %c0_12 = arith.constant 0 : index
    %15 = vector.load %arg8[%c0_10, %c0_11, %c0_12] : memref<4x8x1xf32, #tpu.memory_space<vmem>>, vector<1x8x1xf32>
    %16 = vector.shape_cast %15 : vector<1x8x1xf32> to vector<8x1xf32>
    %cst_13 = arith.constant dense<0xFF800000> : vector<8xf32>
    %17 = vector.multi_reduction <maximumf>, %14, %cst_13 [1] : vector<8x8xf32> to vector<8xf32>
    %18 = vector.shape_cast %17 : vector<8xf32> to vector<8x1xf32>
    %19 = arith.maximumf %16, %18 : vector<8x1xf32>
    %20 = arith.subf %16, %19 : vector<8x1xf32>
    %21 = math.exp %20 : vector<8x1xf32>
    %22 = vector.broadcast %19 : vector<8x1xf32> to vector<8x8xf32>
    %23 = arith.subf %14, %22 : vector<8x8xf32>
    %24 = math.exp %23 : vector<8x8xf32>
    %c0_14 = arith.constant 0 : index
    %c0_15 = arith.constant 0 : index
    %c0_16 = arith.constant 0 : index
    %25 = vector.load %arg9[%c0_14, %c0_15, %c0_16] : memref<4x8x1xf32, #tpu.memory_space<vmem>>, vector<1x8x1xf32>
    %26 = vector.shape_cast %25 : vector<1x8x1xf32> to vector<8x1xf32>
    %27 = arith.mulf %21, %26 : vector<8x1xf32>
    %cst_17 = arith.constant dense<0.000000e+00> : vector<8xf32>
    %28 = vector.multi_reduction <add>, %24, %cst_17 [1] : vector<8x8xf32> to vector<8xf32>
    %29 = vector.shape_cast %28 : vector<8xf32> to vector<8x1xf32>
    %30 = arith.addf %27, %29 : vector<8x1xf32>
    %c0_18 = arith.constant 0 : index
    %c0_19 = arith.constant 0 : index
    %c0_20 = arith.constant 0 : index
    %31 = vector.load %arg9[%c0_18, %c0_19, %c0_20] : memref<4x8x1xf32, #tpu.memory_space<vmem>>, vector<1x8x1xf32>
    %32 = vector.shape_cast %31 : vector<1x8x1xf32> to vector<8x1xf32>
    %33 = vector.shape_cast %30 : vector<8x1xf32> to vector<1x8x1xf32>
    tpu.vector_store %arg9[%c0_18, %c0_19, %c0_20], %33 {strides = array<i32>} : memref<4x8x1xf32, #tpu.memory_space<vmem>>, vector<1x8x1xf32>,
    %c0_21 = arith.constant 0 : index
    %c0_22 = arith.constant 0 : index
    %c0_23 = arith.constant 0 : index
    %34 = vector.load %arg10[%c0_21, %c0_22, %c0_23] : memref<4x8x8xf32, #tpu.memory_space<vmem>>, vector<1x8x8xf32>
    %35 = vector.shape_cast %34 : vector<1x8x8xf32> to vector<8x8xf32>
    %36 = vector.broadcast %21 : vector<8x1xf32> to vector<8x8xf32>
    %37 = arith.mulf %36, %35 : vector<8x8xf32>
    %cst_24 = arith.constant dense<0.000000e+00> : vector<8x8xf32>
    %38 = tpu.matmul %24, %13, %cst_24 {dimension_numbers = #tpu.dot_dimension_numbers<[1], [0], [0], [1], [0, 0, 1, 1], [], []>} : vector<8x8xf32>, vector<8x8xf32>, vector<8x8xf32> -> vector<8x8xf32>
    %39 = arith.addf %37, %38 : vector<8x8xf32>
    %c0_25 = arith.constant 0 : index
    %c0_26 = arith.constant 0 : index
    %c0_27 = arith.constant 0 : index
    %40 = vector.load %arg10[%c0_25, %c0_26, %c0_27] : memref<4x8x8xf32, #tpu.memory_space<vmem>>, vector<1x8x8xf32>
    %41 = vector.shape_cast %40 : vector<1x8x8xf32> to vector<8x8xf32>
    %42 = vector.shape_cast %39 : vector<8x8xf32> to vector<1x8x8xf32>
    tpu.vector_store %arg10[%c0_25, %c0_26, %c0_27], %42 {strides = array<i32>} : memref<4x8x8xf32, #tpu.memory_space<vmem>>, vector<1x8x8xf32>,
    %c0_28 = arith.constant 0 : index
    %c0_29 = arith.constant 0 : index
    %c0_30 = arith.constant 0 : index
    %43 = vector.load %arg8[%c0_28, %c0_29, %c0_30] : memref<4x8x1xf32, #tpu.memory_space<vmem>>, vector<1x8x1xf32>
    %44 = vector.shape_cast %43 : vector<1x8x1xf32> to vector<8x1xf32>
    %45 = vector.shape_cast %19 : vector<8x1xf32> to vector<1x8x1xf32>
    tpu.vector_store %arg8[%c0_28, %c0_29, %c0_30], %45 {strides = array<i32>} : memref<4x8x1xf32, #tpu.memory_space<vmem>>, vector<1x8x1xf32>,
    %46 = vector.extract_strided_slice %6 {offsets = [0, 8], sizes = [8, 8], strides = [1, 1]} : vector<8x32xf32> to vector<8x8xf32>
    %47 = vector.extract_strided_slice %8 {offsets = [0, 8], sizes = [8, 8], strides = [1, 1]} : vector<8x32xf32> to vector<8x8xf32>
    %48 = vector.extract_strided_slice %10 {offsets = [0, 8], sizes = [8, 8], strides = [1, 1]} : vector<8x32xf32> to vector<8x8xf32>
    %cst_31 = arith.constant dense<0.000000e+00> : vector<8x8xf32>
    %49 = tpu.matmul %46, %47, %cst_31 {dimension_numbers = #tpu.dot_dimension_numbers<[1], [1], [0], [0], [0, 0, 1, 0], [], []>} : vector<8x8xf32>, vector<8x8xf32>, vector<8x8xf32> -> vector<8x8xf32>
    %c1 = arith.constant 1 : index
    %c0_32 = arith.constant 0 : index
    %c0_33 = arith.constant 0 : index
    %50 = vector.load %arg8[%c1, %c0_32, %c0_33] : memref<4x8x1xf32, #tpu.memory_space<vmem>>, vector<1x8x1xf32>
    %51 = vector.shape_cast %50 : vector<1x8x1xf32> to vector<8x1xf32>
    %cst_34 = arith.constant dense<0xFF800000> : vector<8xf32>
    %52 = vector.multi_reduction <maximumf>, %49, %cst_34 [1] : vector<8x8xf32> to vector<8xf32>
    %53 = vector.shape_cast %52 : vector<8xf32> to vector<8x1xf32>
    %54 = arith.maximumf %51, %53 : vector<8x1xf32>
    %55 = arith.subf %51, %54 : vector<8x1xf32>
    %56 = math.exp %55 : vector<8x1xf32>
    %57 = vector.broadcast %54 : vector<8x1xf32> to vector<8x8xf32>
    %58 = arith.subf %49, %57 : vector<8x8xf32>
    %59 = math.exp %58 : vector<8x8xf32>
    %c1_35 = arith.constant 1 : index
    %c0_36 = arith.constant 0 : index
    %c0_37 = arith.constant 0 : index
    %60 = vector.load %arg9[%c1_35, %c0_36, %c0_37] : memref<4x8x1xf32, #tpu.memory_space<vmem>>, vector<1x8x1xf32>
    %61 = vector.shape_cast %60 : vector<1x8x1xf32> to vector<8x1xf32>
    %62 = arith.mulf %56, %61 : vector<8x1xf32>
    %cst_38 = arith.constant dense<0.000000e+00> : vector<8xf32>
    %63 = vector.multi_reduction <add>, %59, %cst_38 [1] : vector<8x8xf32> to vector<8xf32>
    %64 = vector.shape_cast %63 : vector<8xf32> to vector<8x1xf32>
    %65 = arith.addf %62, %64 : vector<8x1xf32>
    %c1_39 = arith.constant 1 : index
    %c0_40 = arith.constant 0 : index
    %c0_41 = arith.constant 0 : index
    %66 = vector.load %arg9[%c1_39, %c0_40, %c0_41] : memref<4x8x1xf32, #tpu.memory_space<vmem>>, vector<1x8x1xf32>
    %67 = vector.shape_cast %66 : vector<1x8x1xf32> to vector<8x1xf32>
    %68 = vector.shape_cast %65 : vector<8x1xf32> to vector<1x8x1xf32>
    tpu.vector_store %arg9[%c1_39, %c0_40, %c0_41], %68 {strides = array<i32>} : memref<4x8x1xf32, #tpu.memory_space<vmem>>, vector<1x8x1xf32>,
    %c1_42 = arith.constant 1 : index
    %c0_43 = arith.constant 0 : index
    %c0_44 = arith.constant 0 : index
    %69 = vector.load %arg10[%c1_42, %c0_43, %c0_44] : memref<4x8x8xf32, #tpu.memory_space<vmem>>, vector<1x8x8xf32>
    %70 = vector.shape_cast %69 : vector<1x8x8xf32> to vector<8x8xf32>
    %71 = vector.broadcast %56 : vector<8x1xf32> to vector<8x8xf32>
    %72 = arith.mulf %71, %70 : vector<8x8xf32>
    %cst_45 = arith.constant dense<0.000000e+00> : vector<8x8xf32>
    %73 = tpu.matmul %59, %48, %cst_45 {dimension_numbers = #tpu.dot_dimension_numbers<[1], [0], [0], [1], [0, 0, 1, 1], [], []>} : vector<8x8xf32>, vector<8x8xf32>, vector<8x8xf32> -> vector<8x8xf32>
    %74 = arith.addf %72, %73 : vector<8x8xf32>
    %c1_46 = arith.constant 1 : index
    %c0_47 = arith.constant 0 : index
    %c0_48 = arith.constant 0 : index
    %75 = vector.load %arg10[%c1_46, %c0_47, %c0_48] : memref<4x8x8xf32, #tpu.memory_space<vmem>>, vector<1x8x8xf32>
    %76 = vector.shape_cast %75 : vector<1x8x8xf32> to vector<8x8xf32>
    %77 = vector.shape_cast %74 : vector<8x8xf32> to vector<1x8x8xf32>
    tpu.vector_store %arg10[%c1_46, %c0_47, %c0_48], %77 {strides = array<i32>} : memref<4x8x8xf32, #tpu.memory_space<vmem>>, vector<1x8x8xf32>,
    %c1_49 = arith.constant 1 : index
    %c0_50 = arith.constant 0 : index
    %c0_51 = arith.constant 0 : index
    %78 = vector.load %arg8[%c1_49, %c0_50, %c0_51] : memref<4x8x1xf32, #tpu.memory_space<vmem>>, vector<1x8x1xf32>
    %79 = vector.shape_cast %78 : vector<1x8x1xf32> to vector<8x1xf32>
    %80 = vector.shape_cast %54 : vector<8x1xf32> to vector<1x8x1xf32>
    tpu.vector_store %arg8[%c1_49, %c0_50, %c0_51], %80 {strides = array<i32>} : memref<4x8x1xf32, #tpu.memory_space<vmem>>, vector<1x8x1xf32>,
    %81 = vector.extract_strided_slice %6 {offsets = [0, 16], sizes = [8, 8], strides = [1, 1]} : vector<8x32xf32> to vector<8x8xf32>
    %82 = vector.extract_strided_slice %8 {offsets = [0, 16], sizes = [8, 8], strides = [1, 1]} : vector<8x32xf32> to vector<8x8xf32>
    %83 = vector.extract_strided_slice %10 {offsets = [0, 16], sizes = [8, 8], strides = [1, 1]} : vector<8x32xf32> to vector<8x8xf32>
    %cst_52 = arith.constant dense<0.000000e+00> : vector<8x8xf32>
    %84 = tpu.matmul %81, %82, %cst_52 {dimension_numbers = #tpu.dot_dimension_numbers<[1], [1], [0], [0], [0, 0, 1, 0], [], []>} : vector<8x8xf32>, vector<8x8xf32>, vector<8x8xf32> -> vector<8x8xf32>
    %c2 = arith.constant 2 : index
    %c0_53 = arith.constant 0 : index
    %c0_54 = arith.constant 0 : index
    %85 = vector.load %arg8[%c2, %c0_53, %c0_54] : memref<4x8x1xf32, #tpu.memory_space<vmem>>, vector<1x8x1xf32>
    %86 = vector.shape_cast %85 : vector<1x8x1xf32> to vector<8x1xf32>
    %cst_55 = arith.constant dense<0xFF800000> : vector<8xf32>
    %87 = vector.multi_reduction <maximumf>, %84, %cst_55 [1] : vector<8x8xf32> to vector<8xf32>
    %88 = vector.shape_cast %87 : vector<8xf32> to vector<8x1xf32>
    %89 = arith.maximumf %86, %88 : vector<8x1xf32>
    %90 = arith.subf %86, %89 : vector<8x1xf32>
    %91 = math.exp %90 : vector<8x1xf32>
    %92 = vector.broadcast %89 : vector<8x1xf32> to vector<8x8xf32>
    %93 = arith.subf %84, %92 : vector<8x8xf32>
    %94 = math.exp %93 : vector<8x8xf32>
    %c2_56 = arith.constant 2 : index
    %c0_57 = arith.constant 0 : index
    %c0_58 = arith.constant 0 : index
    %95 = vector.load %arg9[%c2_56, %c0_57, %c0_58] : memref<4x8x1xf32, #tpu.memory_space<vmem>>, vector<1x8x1xf32>
    %96 = vector.shape_cast %95 : vector<1x8x1xf32> to vector<8x1xf32>
    %97 = arith.mulf %91, %96 : vector<8x1xf32>
    %cst_59 = arith.constant dense<0.000000e+00> : vector<8xf32>
    %98 = vector.multi_reduction <add>, %94, %cst_59 [1] : vector<8x8xf32> to vector<8xf32>
    %99 = vector.shape_cast %98 : vector<8xf32> to vector<8x1xf32>
    %100 = arith.addf %97, %99 : vector<8x1xf32>
    %c2_60 = arith.constant 2 : index
    %c0_61 = arith.constant 0 : index
    %c0_62 = arith.constant 0 : index
    %101 = vector.load %arg9[%c2_60, %c0_61, %c0_62] : memref<4x8x1xf32, #tpu.memory_space<vmem>>, vector<1x8x1xf32>
    %102 = vector.shape_cast %101 : vector<1x8x1xf32> to vector<8x1xf32>
    %103 = vector.shape_cast %100 : vector<8x1xf32> to vector<1x8x1xf32>
    tpu.vector_store %arg9[%c2_60, %c0_61, %c0_62], %103 {strides = array<i32>} : memref<4x8x1xf32, #tpu.memory_space<vmem>>, vector<1x8x1xf32>,
    %c2_63 = arith.constant 2 : index
    %c0_64 = arith.constant 0 : index
    %c0_65 = arith.constant 0 : index
    %104 = vector.load %arg10[%c2_63, %c0_64, %c0_65] : memref<4x8x8xf32, #tpu.memory_space<vmem>>, vector<1x8x8xf32>
    %105 = vector.shape_cast %104 : vector<1x8x8xf32> to vector<8x8xf32>
    %106 = vector.broadcast %91 : vector<8x1xf32> to vector<8x8xf32>
    %107 = arith.mulf %106, %105 : vector<8x8xf32>
    %cst_66 = arith.constant dense<0.000000e+00> : vector<8x8xf32>
    %108 = tpu.matmul %94, %83, %cst_66 {dimension_numbers = #tpu.dot_dimension_numbers<[1], [0], [0], [1], [0, 0, 1, 1], [], []>} : vector<8x8xf32>, vector<8x8xf32>, vector<8x8xf32> -> vector<8x8xf32>
    %109 = arith.addf %107, %108 : vector<8x8xf32>
    %c2_67 = arith.constant 2 : index
    %c0_68 = arith.constant 0 : index
    %c0_69 = arith.constant 0 : index
    %110 = vector.load %arg10[%c2_67, %c0_68, %c0_69] : memref<4x8x8xf32, #tpu.memory_space<vmem>>, vector<1x8x8xf32>
    %111 = vector.shape_cast %110 : vector<1x8x8xf32> to vector<8x8xf32>
    %112 = vector.shape_cast %109 : vector<8x8xf32> to vector<1x8x8xf32>
    tpu.vector_store %arg10[%c2_67, %c0_68, %c0_69], %112 {strides = array<i32>} : memref<4x8x8xf32, #tpu.memory_space<vmem>>, vector<1x8x8xf32>,
    %c2_70 = arith.constant 2 : index
    %c0_71 = arith.constant 0 : index
    %c0_72 = arith.constant 0 : index
    %113 = vector.load %arg8[%c2_70, %c0_71, %c0_72] : memref<4x8x1xf32, #tpu.memory_space<vmem>>, vector<1x8x1xf32>
    %114 = vector.shape_cast %113 : vector<1x8x1xf32> to vector<8x1xf32>
    %115 = vector.shape_cast %89 : vector<8x1xf32> to vector<1x8x1xf32>
    tpu.vector_store %arg8[%c2_70, %c0_71, %c0_72], %115 {strides = array<i32>} : memref<4x8x1xf32, #tpu.memory_space<vmem>>, vector<1x8x1xf32>,
    %116 = vector.extract_strided_slice %6 {offsets = [0, 24], sizes = [8, 8], strides = [1, 1]} : vector<8x32xf32> to vector<8x8xf32>
    %117 = vector.extract_strided_slice %8 {offsets = [0, 24], sizes = [8, 8], strides = [1, 1]} : vector<8x32xf32> to vector<8x8xf32>
    %118 = vector.extract_strided_slice %10 {offsets = [0, 24], sizes = [8, 8], strides = [1, 1]} : vector<8x32xf32> to vector<8x8xf32>
    %cst_73 = arith.constant dense<0.000000e+00> : vector<8x8xf32>
    %119 = tpu.matmul %116, %117, %cst_73 {dimension_numbers = #tpu.dot_dimension_numbers<[1], [1], [0], [0], [0, 0, 1, 0], [], []>} : vector<8x8xf32>, vector<8x8xf32>, vector<8x8xf32> -> vector<8x8xf32>
    %c3 = arith.constant 3 : index
    %c0_74 = arith.constant 0 : index
    %c0_75 = arith.constant 0 : index
    %120 = vector.load %arg8[%c3, %c0_74, %c0_75] : memref<4x8x1xf32, #tpu.memory_space<vmem>>, vector<1x8x1xf32>
    %121 = vector.shape_cast %120 : vector<1x8x1xf32> to vector<8x1xf32>
    %cst_76 = arith.constant dense<0xFF800000> : vector<8xf32>
    %122 = vector.multi_reduction <maximumf>, %119, %cst_76 [1] : vector<8x8xf32> to vector<8xf32>
    %123 = vector.shape_cast %122 : vector<8xf32> to vector<8x1xf32>
    %124 = arith.maximumf %121, %123 : vector<8x1xf32>
    %125 = arith.subf %121, %124 : vector<8x1xf32>
    %126 = math.exp %125 : vector<8x1xf32>
    %127 = vector.broadcast %124 : vector<8x1xf32> to vector<8x8xf32>
    %128 = arith.subf %119, %127 : vector<8x8xf32>
    %129 = math.exp %128 : vector<8x8xf32>
    %c3_77 = arith.constant 3 : index
    %c0_78 = arith.constant 0 : index
    %c0_79 = arith.constant 0 : index
    %130 = vector.load %arg9[%c3_77, %c0_78, %c0_79] : memref<4x8x1xf32, #tpu.memory_space<vmem>>, vector<1x8x1xf32>
    %131 = vector.shape_cast %130 : vector<1x8x1xf32> to vector<8x1xf32>
    %132 = arith.mulf %126, %131 : vector<8x1xf32>
    %cst_80 = arith.constant dense<0.000000e+00> : vector<8xf32>
    %133 = vector.multi_reduction <add>, %129, %cst_80 [1] : vector<8x8xf32> to vector<8xf32>
    %134 = vector.shape_cast %133 : vector<8xf32> to vector<8x1xf32>
    %135 = arith.addf %132, %134 : vector<8x1xf32>
    %c3_81 = arith.constant 3 : index
    %c0_82 = arith.constant 0 : index
    %c0_83 = arith.constant 0 : index
    %136 = vector.load %arg9[%c3_81, %c0_82, %c0_83] : memref<4x8x1xf32, #tpu.memory_space<vmem>>, vector<1x8x1xf32>
    %137 = vector.shape_cast %136 : vector<1x8x1xf32> to vector<8x1xf32>
    %138 = vector.shape_cast %135 : vector<8x1xf32> to vector<1x8x1xf32>
    tpu.vector_store %arg9[%c3_81, %c0_82, %c0_83], %138 {strides = array<i32>} : memref<4x8x1xf32, #tpu.memory_space<vmem>>, vector<1x8x1xf32>,
    %c3_84 = arith.constant 3 : index
    %c0_85 = arith.constant 0 : index
    %c0_86 = arith.constant 0 : index
    %139 = vector.load %arg10[%c3_84, %c0_85, %c0_86] : memref<4x8x8xf32, #tpu.memory_space<vmem>>, vector<1x8x8xf32>
    %140 = vector.shape_cast %139 : vector<1x8x8xf32> to vector<8x8xf32>
    %141 = vector.broadcast %126 : vector<8x1xf32> to vector<8x8xf32>
    %142 = arith.mulf %141, %140 : vector<8x8xf32>
    %cst_87 = arith.constant dense<0.000000e+00> : vector<8x8xf32>
    %143 = tpu.matmul %129, %118, %cst_87 {dimension_numbers = #tpu.dot_dimension_numbers<[1], [0], [0], [1], [0, 0, 1, 1], [], []>} : vector<8x8xf32>, vector<8x8xf32>, vector<8x8xf32> -> vector<8x8xf32>
    %144 = arith.addf %142, %143 : vector<8x8xf32>
    %c3_88 = arith.constant 3 : index
    %c0_89 = arith.constant 0 : index
    %c0_90 = arith.constant 0 : index
    %145 = vector.load %arg10[%c3_88, %c0_89, %c0_90] : memref<4x8x8xf32, #tpu.memory_space<vmem>>, vector<1x8x8xf32>
    %146 = vector.shape_cast %145 : vector<1x8x8xf32> to vector<8x8xf32>
    %147 = vector.shape_cast %144 : vector<8x8xf32> to vector<1x8x8xf32>
    tpu.vector_store %arg10[%c3_88, %c0_89, %c0_90], %147 {strides = array<i32>} : memref<4x8x8xf32, #tpu.memory_space<vmem>>, vector<1x8x8xf32>,
    %c3_91 = arith.constant 3 : index
    %c0_92 = arith.constant 0 : index
    %c0_93 = arith.constant 0 : index
    %148 = vector.load %arg8[%c3_91, %c0_92, %c0_93] : memref<4x8x1xf32, #tpu.memory_space<vmem>>, vector<1x8x1xf32>
    %149 = vector.shape_cast %148 : vector<1x8x1xf32> to vector<8x1xf32>
    %150 = vector.shape_cast %124 : vector<8x1xf32> to vector<1x8x1xf32>
    tpu.vector_store %arg8[%c3_91, %c0_92, %c0_93], %150 {strides = array<i32>} : memref<4x8x1xf32, #tpu.memory_space<vmem>>, vector<1x8x1xf32>,
    %c3_i32 = arith.constant 3 : i32
    %151 = arith.cmpi eq, %arg3, %c3_i32 : i32
    %152 = arith.extui %151 : i1 to i32
    %c0_i32_94 = arith.constant 0 : i32
    %153 = arith.cmpi ne, %152, %c0_i32_94 : i32
    scf.if %153 {
      %c0_95 = arith.constant 0 : index
      %c0_96 = arith.constant 0 : index
      %c0_97 = arith.constant 0 : index
      %154 = vector.load %arg9[%c0_95, %c0_96, %c0_97] : memref<4x8x1xf32, #tpu.memory_space<vmem>>, vector<1x8x1xf32>
      %155 = vector.shape_cast %154 : vector<1x8x1xf32> to vector<8x1xf32>
      %156 = tpu.reciprocal %155 {approx = true} : vector<8x1xf32> -> vector<8x1xf32>
      %c0_98 = arith.constant 0 : index
      %c0_99 = arith.constant 0 : index
      %c0_100 = arith.constant 0 : index
      %157 = vector.load %arg10[%c0_98, %c0_99, %c0_100] : memref<4x8x8xf32, #tpu.memory_space<vmem>>, vector<1x8x8xf32>
      %158 = vector.shape_cast %157 : vector<1x8x8xf32> to vector<8x8xf32>
      %159 = vector.broadcast %156 : vector<8x1xf32> to vector<8x8xf32>
      %160 = arith.mulf %158, %159 : vector<8x8xf32>
      %c0_101 = arith.constant 0 : index
      %c0_102 = arith.constant 0 : index
      %c0_103 = arith.constant 0 : index
      %161 = vector.load %arg7[%c0_101, %c0_102, %c0_103] : memref<1x8x32xf32, #tpu.memory_space<vmem>>, vector<1x8x8xf32>
      %162 = vector.shape_cast %161 : vector<1x8x8xf32> to vector<8x8xf32>
      %163 = vector.shape_cast %160 : vector<8x8xf32> to vector<1x8x8xf32>
      tpu.vector_store %arg7[%c0_101, %c0_102, %c0_103], %163 {strides = array<i32>} : memref<1x8x32xf32, #tpu.memory_space<vmem>>, vector<1x8x8xf32>,
      %c1_104 = arith.constant 1 : index
      %c0_105 = arith.constant 0 : index
      %c0_106 = arith.constant 0 : index
      %164 = vector.load %arg9[%c1_104, %c0_105, %c0_106] : memref<4x8x1xf32, #tpu.memory_space<vmem>>, vector<1x8x1xf32>
      %165 = vector.shape_cast %164 : vector<1x8x1xf32> to vector<8x1xf32>
      %166 = tpu.reciprocal %165 {approx = true} : vector<8x1xf32> -> vector<8x1xf32>
      %c1_107 = arith.constant 1 : index
      %c0_108 = arith.constant 0 : index
      %c0_109 = arith.constant 0 : index
      %167 = vector.load %arg10[%c1_107, %c0_108, %c0_109] : memref<4x8x8xf32, #tpu.memory_space<vmem>>, vector<1x8x8xf32>
      %168 = vector.shape_cast %167 : vector<1x8x8xf32> to vector<8x8xf32>
      %169 = vector.broadcast %166 : vector<8x1xf32> to vector<8x8xf32>
      %170 = arith.mulf %168, %169 : vector<8x8xf32>
      %c0_110 = arith.constant 0 : index
      %c0_111 = arith.constant 0 : index
      %c8 = arith.constant 8 : index
      %171 = vector.load %arg7[%c0_110, %c0_111, %c8] : memref<1x8x32xf32, #tpu.memory_space<vmem>>, vector<1x8x8xf32>
      %172 = vector.shape_cast %171 : vector<1x8x8xf32> to vector<8x8xf32>
      %173 = vector.shape_cast %170 : vector<8x8xf32> to vector<1x8x8xf32>
      tpu.vector_store %arg7[%c0_110, %c0_111, %c8], %173 {strides = array<i32>} : memref<1x8x32xf32, #tpu.memory_space<vmem>>, vector<1x8x8xf32>,
      %c2_112 = arith.constant 2 : index
      %c0_113 = arith.constant 0 : index
      %c0_114 = arith.constant 0 : index
      %174 = vector.load %arg9[%c2_112, %c0_113, %c0_114] : memref<4x8x1xf32, #tpu.memory_space<vmem>>, vector<1x8x1xf32>
      %175 = vector.shape_cast %174 : vector<1x8x1xf32> to vector<8x1xf32>
      %176 = tpu.reciprocal %175 {approx = true} : vector<8x1xf32> -> vector<8x1xf32>
      %c2_115 = arith.constant 2 : index
      %c0_116 = arith.constant 0 : index
      %c0_117 = arith.constant 0 : index
      %177 = vector.load %arg10[%c2_115, %c0_116, %c0_117] : memref<4x8x8xf32, #tpu.memory_space<vmem>>, vector<1x8x8xf32>
      %178 = vector.shape_cast %177 : vector<1x8x8xf32> to vector<8x8xf32>
      %179 = vector.broadcast %176 : vector<8x1xf32> to vector<8x8xf32>
      %180 = arith.mulf %178, %179 : vector<8x8xf32>
      %c0_118 = arith.constant 0 : index
      %c0_119 = arith.constant 0 : index
      %c16 = arith.constant 16 : index
      %181 = vector.load %arg7[%c0_118, %c0_119, %c16] : memref<1x8x32xf32, #tpu.memory_space<vmem>>, vector<1x8x8xf32>
      %182 = vector.shape_cast %181 : vector<1x8x8xf32> to vector<8x8xf32>
      %183 = vector.shape_cast %180 : vector<8x8xf32> to vector<1x8x8xf32>
      tpu.vector_store %arg7[%c0_118, %c0_119, %c16], %183 {strides = array<i32>} : memref<1x8x32xf32, #tpu.memory_space<vmem>>, vector<1x8x8xf32>,
      %c3_120 = arith.constant 3 : index
      %c0_121 = arith.constant 0 : index
      %c0_122 = arith.constant 0 : index
      %184 = vector.load %arg9[%c3_120, %c0_121, %c0_122] : memref<4x8x1xf32, #tpu.memory_space<vmem>>, vector<1x8x1xf32>
      %185 = vector.shape_cast %184 : vector<1x8x1xf32> to vector<8x1xf32>
      %186 = tpu.reciprocal %185 {approx = true} : vector<8x1xf32> -> vector<8x1xf32>
      %c3_123 = arith.constant 3 : index
      %c0_124 = arith.constant 0 : index
      %c0_125 = arith.constant 0 : index
      %187 = vector.load %arg10[%c3_123, %c0_124, %c0_125] : memref<4x8x8xf32, #tpu.memory_space<vmem>>, vector<1x8x8xf32>
      %188 = vector.shape_cast %187 : vector<1x8x8xf32> to vector<8x8xf32>
      %189 = vector.broadcast %186 : vector<8x1xf32> to vector<8x8xf32>
      %190 = arith.mulf %188, %189 : vector<8x8xf32>
      %c0_126 = arith.constant 0 : index
      %c0_127 = arith.constant 0 : index
      %c24 = arith.constant 24 : index
      %191 = vector.load %arg7[%c0_126, %c0_127, %c24] : memref<1x8x32xf32, #tpu.memory_space<vmem>>, vector<1x8x8xf32>
      %192 = vector.shape_cast %191 : vector<1x8x8xf32> to vector<8x8xf32>
      %193 = vector.shape_cast %190 : vector<8x8xf32> to vector<1x8x8xf32>
      tpu.vector_store %arg7[%c0_126, %c0_127, %c24], %193 {strides = array<i32>} : memref<1x8x32xf32, #tpu.memory_space<vmem>>, vector<1x8x8xf32>,
    } else {
    }
    return
  }
  func.func @transform_0(%arg0: i32, %arg1: i32, %arg2: i32, %arg3: i32) -> (i32, i32, i32) {
    %c0_i32 = arith.constant 0 : i32
    return %arg0, %arg2, %arg1 : i32, i32, i32
  }
  func.func @transform_1(%arg0: i32, %arg1: i32, %arg2: i32, %arg3: i32) -> (i32, i32, i32) {
    %c0_i32 = arith.constant 0 : i32
    return %arg0, %arg3, %arg1 : i32, i32, i32
  }
  func.func @transform_2(%arg0: i32, %arg1: i32, %arg2: i32, %arg3: i32) -> (i32, i32, i32) {
    %c0_i32 = arith.constant 0 : i32
    return %arg0, %arg3, %arg1 : i32, i32, i32
  }
  func.func @transform_3(%arg0: i32, %arg1: i32, %arg2: i32, %arg3: i32) -> (i32, i32, i32) {
    %c0_i32 = arith.constant 0 : i32
    return %arg0, %arg2, %arg1 : i32, i32, i32
  }
}

</mosaic_0001>

<bundles_post_ra>
// kernel: plain_mha_forward.5
= control target key start
LH: loop header
LB: loop body
LE: loop exit
PB: predicated region body
PF: predicated region fallthrough
CT: control target
= control target key end

     0   :  { %8 = vsyncpa [#allocation3], 0  ;;  %s1083_s0 = inlined_call_operand.hbm [shape: f32[64,32], index: 0, kind: input, shape index: {}]   ;;  %s1084_s1 = inlined_call_operand.hbm [shape: f32[32,32], index: 1, kind: input, shape index: {}]   ;;  %s1085_s2 = inlined_call_operand.hbm [shape: f32[1,32], index: 2, kind: input, shape index: {}]   ;;  %s1086_s3 = inlined_call_operand.hbm [shape: f32[64,32], index: 3, kind: output, shape index: {}]  }
   0x1   :  { %10 = vsyncpa [#allocation3 + $0x1], 0 }
   0x2   :  { %11 = vsyncpa [#allocation6], 0 }
   0x3   :  { %12 = vsyncpa [#allocation4], 0 }
   0x4   :  { %14 = vsyncpa [#allocation4 + $0x1], 0  ;;  %s824_s12 = smov 0   ;;  %s826_s13 = smov 0  }
   0x5   :  { %s828_s14 = smov 0   ;;  %s830_s15 = smov 0  }
   0x6   :  { %s832_s16 = smov 0   ;;  %s834_s17 = smov 0  }
   0x7 LB: > { %s478_s18 = sadd.s32 4294967295, %s794_s17   ;;  %s479_s19 = sadd.s32 4294967294, %s794_s17   ;;  %s794_s17 = sphi %s834_s17, %s20_s17   ;;  %s790_s16 = sphi %s832_s16, %s1108_s16   ;;  %s786_s15 = sphi %s830_s15, %s1107_s15   ;;  %s782_s14 = sphi %s828_s14, %s1106_s14   ;;  %s778_s13 = sphi %s826_s13, %s1105_s13   ;;  %s774_s12 = sphi %s824_s12, %s1104_s12  }
   0x8   : > { %p52_p0 = scmp.ne.s32.totalorder %s778_s13, %s774_s12  ;;  %p858_p1 = scmp.eq.s32.totalorder %s478_s18, 0 }
   0x9   : > { %p862_p2 = scmp.eq.s32.totalorder %s478_s18, 3  ;;  %p136_p3 = scmp.eq.s32.totalorder %s479_s19, 3 }
   0xa   : > { %s1091_s20 = scalar_select %p858_p1, 1, 0 }
   0xb   : > { %s1092_s21 = scalar_select %p862_p2, 1, 0 }
   0xc   : > { %p868_p4 = por %p858_p1, %p52_p0  ;;  %p480_p5 = scmp.ge.s32.totalorder %s794_s17, 1 }
   0xd   : > { %p873_p6 = por %p136_p3, %p52_p0  ;;  %p143_p7 = scmp.lt.s32.totalorder %s794_s17, 5 }
   0xe   : > { %s1093_s22 = scalar_select %p868_p4, 1, 0 }
   0xf   : > { %s1094_s23 = scalar_select %p873_p6, 1, 0 }
  0x10   : > { %p878_p8 = pnand %p480_p5, %p143_p7  ;;  %s796_s25 = smov [#allocation5]  }
  0x11   : > { %s158_s26 = sshll.u32 %s796_s25, 4  ;;  %s797_s28 = smov [#allocation7]   ;;  %s159_s26 = int_to_ptr.vmem [resolvable:$true] %s158_s26 }
  0x12   : > { %s1095_s24 = scalar_select %p878_p8, 1, 0 }
  0x13   : > { %p547_p9 = pneg %p878_p8  ;;  %s174_s29 = sshll.u32 %s797_s28, 4  ;;  %s890_s29 = int_to_ptr.vmem [resolvable:$true] %s174_s29 }
  0x14   : > { %s622_s5 = scalar_lea.hbm %s1084_s1, 512 }
  0x15   : > { %p886_p10 = pnand %p547_p9, %p858_p1  ;;  %p623_p11 = scmp.ne.s32.totalorder %s1084_s1, %s622_s5 }
  0x16   : > { %p629_p3 = scmp.lt.u32.totalorder %s622_s5, %s1084_s1 }
  0x17   : > { %p624_p12 = pneg %p886_p10 }
  0x19   : > { %p625_p13 = pnand %p624_p12, %p623_p11 }
  0x1b   : > { %p626_p0 = pneg %p625_p13 }
  0x1d   : > { %p631_p5 = pnand %p629_p3, %p626_p0 }
  0x1f   : > { %634 = shalt.err (!%p631_p5)
}
  0x20   : > { %s635_s10 = scalar_lea.vmem %s159_s26, 512  ;;  %p643_p1 = scmp.lt.s32.totalorder %s159_s26, %s159_s26 }
  0x21   : > { %p636_p7 = scmp.ne.s32.totalorder %s159_s26, %s635_s10  ;;  %p644_p4 = scmp.lt.s32.totalorder %s635_s10, %s635_s10 }
  0x23   : > { %p638_p9 = pnand %p636_p7, %p624_p12  ;;  %p645_p8 = por %p644_p4, %p643_p1 }
  0x25   : > { %p639_p6 = pneg %p638_p9 }
  0x27   : > { %p646_p2 = pnand %p645_p8, %p639_p6 }
  0x29   : > { %649 = shalt.err (!%p646_p2)
}
  0x2a   : > { %s798_s11 = smov 128   ;;  %s799_s18 = smov 8  }
  0x2b   : > { %550 = dma.hbm_to_vmem [thread:$0]  (!%p886_p10), %s1084_s1, 512, %s159_s26, [#allocation6], %s798_s11, %s798_s11, %s799_s18  }
  0x2c   : > { %s650_s4 = scalar_lea.hbm %s1085_s2, 16 }
  0x2d   : > { %p651_p1 = scmp.ne.s32.totalorder %s1085_s2, %s650_s4  ;;  %p657_p6 = scmp.lt.u32.totalorder %s650_s4, %s1085_s2 }
  0x2f   : > { %p653_p2 = pnand %p651_p1, %p624_p12 }
  0x31   : > { %p654_p4 = pneg %p653_p2 }
  0x33   : > { %p659_p8 = pnand %p657_p6, %p654_p4 }
  0x35   : > { %662 = shalt.err (!%p659_p8)
}
  0x36   : > { %s663_s26 = scalar_lea.vmem %s890_s29, 16  ;;  %s670_s9 = scalar_lea.vmem %s890_s29, 32 }
  0x37   : > { %p664_p11 = scmp.ne.s32.totalorder %s890_s29, %s663_s26  ;;  %p671_p3 = scmp.lt.s32.totalorder %s890_s29, %s890_s29 }
  0x38   : > { %p672_p5 = scmp.lt.s32.totalorder %s670_s9, %s663_s26 }
  0x39   : > { %p666_p13 = pnand %p664_p11, %p624_p12 }
  0x3a   : > { %p673_p7 = por %p672_p5, %p671_p3 }
  0x3b   : > { %p667_p0 = pneg %p666_p13 }
  0x3d   : > { %p674_p9 = pnand %p673_p7, %p667_p0 }
  0x3f   : > { %677 = shalt.err (!%p674_p9)
}
  0x40   : > { %553 = dma.hbm_to_vmem [thread:$0]  (!%p886_p10), %s1085_s2, 16, %s890_s29, [#allocation6]  }
  0x41   : > { %s32_s25 = sadd.s32 1, %s790_s16  ;;  %s39_s28 = sadd.s32 1, %s782_s14 }
  0x42   : > { %p34_p12 = scmp.ge.s32.totalorder %s32_s25, 4  ;;  %p46_p1 = scmp.ne.s32.totalorder %s782_s14, %s778_s13 }
  0x43   : > { %p47_p2 = scmp.eq.s32.totalorder %s794_s17, 0  ;;  %p564_p4 = scmp.lt.s32.totalorder %s794_s17, 4 }
  0x44   : > { %s1110_s25 = smov (%p34_p12, %s32_s25), 0  ;;  %p1097_p8 = scmp.ne.s32.totalorder %s1092_s21, 0 }
  0x45   : > { %p48_p6 = por %p47_p2, %p46_p1  ;;  %s36_s30 = ssub.s32 %s790_s16, %s1110_s25 }
  0x46   : > { %p953_p11 = por %p1097_p8, %p46_p1  ;;  %s185_s4 = sand.u32 1, %s782_s14  }
  0x47   : > { %p37_p13 = scmp.eq.s32.totalorder %s36_s30, 0  ;;  %s484_s29 = sshll.u32 %s185_s4, 4 }
  0x48   : > { %s504_s5 = sshll.u32 %s790_s16, 8  ;;  %s189_s21 = scalar_lea.vmem [#allocation2], %s484_s29 }
  0x49   : > { %s962_s6 = scalar_select %p37_p13, %s782_s14, %s39_s28  }
  0x4a   : > { %s967_s26 = scalar_lea.hbm %s1083_s0, %s504_s5  ;;  %s196_s9 = sshll.u32 %s189_s21, 4  ;;  %s975_s9 = int_to_ptr.vmem [resolvable:$true] %s196_s9 }
  0x4b   : > { %p971_p10 = pnand %p564_p4, %p48_p6  ;;  %s977_s19 = scalar_lea.sflag [#allocation3], %s185_s4 }
  0x4c   : > { %s678_s28 = scalar_lea.hbm %s967_s26, 256  ;;  %s683_s5 = scalar_lea.hbm %s1083_s0, 1024 }
  0x4d   : > { %p679_p0 = scmp.ne.s32.totalorder %s967_s26, %s678_s28  ;;  %p680_p3 = pneg %p971_p10 }
  0x4e   : > { %p684_p9 = scmp.lt.u32.totalorder %s967_s26, %s1083_s0  ;;  %p685_p12 = scmp.lt.u32.totalorder %s683_s5, %s678_s28 }
  0x4f   : > { %p681_p5 = pnand %p680_p3, %p679_p0  ;;  %p687_p2 = scmp.lt.u32.totalorder %s678_s28, %s967_s26 }
  0x50   : > { %p686_p1 = por %p685_p12, %p684_p9 }
  0x51   : > { %p682_p7 = pneg %p681_p5 }
  0x52   : > { %p688_p4 = por %p687_p2, %p686_p1 }
  0x54   : > { %p689_p6 = pnand %p688_p4, %p682_p7 }
  0x56   : > { %692 = shalt.err (!%p689_p6)
}
  0x57   : > { %s693_s4 = scalar_lea.vmem %s975_s9, 256  ;;  %s800_s21 = smov [#allocation2]  }
  0x58   : > { %p694_p8 = scmp.ne.s32.totalorder %s975_s9, %s693_s4  ;;  %s698_s30 = sshll.u32 %s800_s21, 4  ;;  %s699_s30 = int_to_ptr.vmem [resolvable:$false] %s698_s30 }
  0x59   : > { %s700_s29 = scalar_lea.vmem %s699_s30, 512  ;;  %p701_p5 = scmp.lt.s32.totalorder %s975_s9, %s699_s30 }
  0x5a   : > { %p696_p13 = pnand %p694_p8, %p680_p3  ;;  %p702_p9 = scmp.lt.s32.totalorder %s700_s29, %s693_s4 }
  0x5c   : > { %p697_p0 = pneg %p696_p13  ;;  %p703_p12 = por %p702_p9, %p701_p5 }
  0x5e   : > { %p704_p1 = pnand %p703_p12, %p697_p0 }
  0x60   : > { %707 = shalt.err (!%p704_p1)
}
  0x61   : > { %557 = dma.hbm_to_vmem [thread:$0]  (!%p971_p10), %s967_s26, 256, %s975_s9, %s977_s19, %s798_s11, %s798_s11, %s799_s18  }
  0x62   : > { %p1100_p3 = scmp.ne.s32.totalorder %s1095_s24, 0 }
  0x63   : > { %s1011_s28 = sand.u32 (!%p1100_p3), 1, %s778_s13   ;;  %p1101_p7 = scmp.ne.s32.totalorder (!%p1100_p3), %s1093_s22, 0 }
  0x64   : > { %208 = sbr.rel (%p1100_p3) target bundleno = 360 (0x168), region = 32  ;;  %s488_s5 = sshll.u32 (!%p1100_p3), %s1011_s28, 4 }
  0x65   : > { %s211_s7 = scalar_lea.sflag (!%p1100_p3), [#allocation3], %s1011_s28  ;;  %s214_s8 = scalar_lea.vmem (!%p1100_p3), [#allocation2], %s488_s5 }
  0x6b   : > { %761 = dma.done.wait (%p1101_p7), %s211_s7, 256  }
  0x6c   : > { %763 = vsyncadd (%p1101_p7), %s211_s7, 4294967040  ;;  %p1102_p2 = scmp.ne.s32.totalorder %s1091_s20, 0 }
  0x6e   : > { %765 = dma.done.wait (%p1102_p2), [#allocation6], 528  }
  0x6f   : > { %767 = vsyncadd (%p1102_p2), [#allocation6], 4294966768  ;;  %vm261_vm0 = vcmask 261120   ;;  %v250_v0 = vld [vmem:[#allocation5] sm:$0xff]  ;;  %v251_v1 = vld [vmem:[#allocation5 + $0x8] sm:$0xff]  ;;  %s244_s20 = scalar_lea.vmem [#allocation8], %s488_s5 }
  0x70   : > { %vm524_vm1 = vmpackc.low %vm261_vm0, %vm261_vm0  ;;  %v252_v2 = vld [vmem:[#allocation5 + $0x10] sm:$0xff]  ;;  %v523_v3 = vpack.c.bf16 %v251_v1, %v250_v0  ;;  %v253_v4 = vld [vmem:[#allocation5 + $0x18] sm:$0xff]  ;;  %s372_s22 = sshll.u32 %s244_s20, 4  ;;  %s505_s24 = sshll.u32 %s786_s15, 8  ;;  %s1028_s22 = int_to_ptr.vmem [resolvable:$true] %s372_s22 }
  0x71   : > { %v248_v5 = vld [vmem:[%s214_s8] sm:$0xff]  ;;  %v529_v6 = vpack.c.bf16 %v253_v4, %v252_v2  ;;  %v249_v7 = vld [vmem:[%s214_s8 + $0x8] sm:$0xff]  ;;  %s1033_s26 = scalar_lea.hbm %s1086_s3, %s505_s24  ;;  %s358_s9 = scalar_lea.sflag [#allocation4], %s1011_s28 }
  0x72   : > { %520 = vmatprep.mubr.msk.f32.mxu0 %vm261_vm0, %v248_v5  ;;  %525 = vmatprep.subr.msk.bf16.mxu0 %vm524_vm1, %v523_v3  ;;  %v492_v8 = vld [vmem:[#allocation7] ss:$0 sm:$0xff]  ;;  %s708_s15 = scalar_lea.vmem %s1028_s22, 256  ;;  %s801_s10 = smov [#allocation8]  }
  0x73   : > { %528 = vmatpush3.bf16.xpose.msk.msra.mxu0 %vm524_vm1, %v523_v3  ;;  %p709_p10 = scmp.ne.s32.totalorder %s1028_s22, %s708_s15  ;;  %s712_s19 = sshll.u32 %s801_s10, 4  ;;  %s713_s19 = int_to_ptr.vmem [resolvable:$false] %s712_s19 }
  0x74   : > { %531 = vmatprep.subr.msk.bf16.mxu0 %vm524_vm1, %v529_v6  ;;  %s714_s4 = scalar_lea.vmem %s713_s19, 512  ;;  %p715_p8 = scmp.lt.s32.totalorder %s1028_s22, %s713_s19 }
  0x75   : > { %p710_p4 = pnand %p709_p10, %p953_p11  ;;  %p716_p13 = scmp.lt.s32.totalorder %s714_s4, %s708_s15 }
  0x77   : > { %p711_p6 = pneg %p710_p4  ;;  %p717_p0 = por %p716_p13, %p715_p8 }
  0x79   : > { %p718_p5 = pnand %p717_p0, %p711_p6 }
  0x7b   : > { %534 = vmatpush3.bf16.xpose.msk.msra.mxu0 %vm524_vm1, %v529_v6 }
  0x82   : > { %521 = vmatmul.mubr.msk.f32.vlgmr.msra.gmra.mrb[0].mxu0 %vm261_vm0, %v249_v7 }
 0x155   : > { %v522_v9 = vpop.f32.mrb[0].mxu0 }
 0x156   : > { %v352_v10 = vadd.f32 %v522_v9, %v492_v8  ;;  %v346_v11 = vpop.f32.mrb[1].mxu0 }
 0x157   : > { %v347_v12 = vadd.f32 %v492_v8, %v346_v11 }
 0x158   : > { %356 = vst.msk [vmem:[%s244_s20 + $0x8] sm:$0xff] %vm261_vm0, %v352_v10 }
 0x159   : > { %355 = vst.msk [vmem:[%s244_s20] sm:$0xff] %vm261_vm0, %v347_v12 }
 0x15a   : > { %721 = shalt.err (!%p718_p5)
}
 0x15b   : > { %s722_s21 = scalar_lea.hbm %s1033_s26, 256  ;;  %s726_s5 = scalar_lea.hbm %s1086_s3, 1024 }
 0x15c   : > { %p723_p9 = scmp.ne.s32.totalorder %s1033_s26, %s722_s21  ;;  %p727_p3 = scmp.lt.u32.totalorder %s1033_s26, %s1086_s3 }
 0x15d   : > { %p728_p7 = scmp.lt.u32.totalorder %s726_s5, %s722_s21  ;;  %p730_p10 = scmp.lt.u32.totalorder %s722_s21, %s1033_s26 }
 0x15e   : > { %p724_p12 = pnand %p723_p9, %p953_p11 }
 0x15f   : > { %p729_p2 = por %p728_p7, %p727_p3 }
 0x160   : > { %p725_p1 = pneg %p724_p12 }
 0x161   : > { %p731_p4 = por %p730_p10, %p729_p2 }
 0x163   : > { %p732_p6 = pnand %p731_p4, %p725_p1 }
 0x165   : > { %735 = shalt.err (!%p732_p6)
}
 0x166   : > { %s802_s20 = smov 128   ;;  %s803_s24 = smov 8  }
 0x167   : > { %545 = dma.vmem_to_hbm [thread:$0]  (%p953_p11), %s1028_s22, 256, %s1033_s26, %s358_s9, %s802_s20, %s802_s20, %s803_s24  }
 0x168 PF: > { %p567_p8 = scmp.ge.s32.totalorder %s794_s17, 2  ;;  %s387_s11 = sand.u32 1, %s774_s12  }
 0x169   : > { %p1103_p13 = scmp.ne.s32.totalorder %s1094_s23, 0  ;;  %s388_s18 = scalar_lea.sflag [#allocation4], %s387_s11 }
 0x16b   : > { %p559_p0 = pnand %p567_p8, %p1103_p13 }
 0x16d   : > { %769 = dma.done.wait (!%p559_p0), %s388_s18, 256  }
 0x16e   : > { %771 = vsyncadd (!%p559_p0), %s388_s18, 4294967040  ;;  %s20_s17 = sadd.s32 1, %s794_s17   ;;  %s1104_s12 = smov %s778_s13 }
 0x16f   : > { %p17_p5 = scmp.ge.s32.totalorder %s20_s17, 6   ;;  %s1105_s13 = smov %s782_s14 }
 0x170   : > { %s1106_s14 = smov %s962_s6  ;;  %s1107_s15 = smov %s790_s16 }
 0x171   : > { %s1108_s16 = smov %s1110_s25  ;;  %19 = sbr.rel (!%p17_p5) target bundleno = 7 (0x7), region = 87 }
 0x178   :  { %393 = vsyncpa [#allocation3], 1 }
 0x179   :  { %395 = vsyncpa [#allocation3 + $0x1], 1 }
 0x17a   :  { %396 = vsyncpa [#allocation6], 1 }
 0x17b   :  { %397 = vsyncpa [#allocation4], 1 }
 0x17c   :  { %399 = vsyncpa [#allocation4 + $0x1], 1 }

// kernel: plain_mha_forward.3
= control target key start
LH: loop header
LB: loop body
LE: loop exit
PB: predicated region body
PF: predicated region fallthrough
CT: control target
= control target key end

     0   :  { %s2063_s0 = inlined_call_operand.hbm [shape: f32[64,32], index: 0, kind: input, shape index: {}]   ;;  %s2064_s1 = inlined_call_operand.hbm [shape: f32[96,32], index: 1, kind: input, shape index: {}, may-alias: {1,2,3}]   ;;  %s2065_s2 = inlined_call_operand.hbm [shape: f32[96,32], index: 2, kind: input, shape index: {}, may-alias: {1,2,3}]   ;;  %s2066_s3 = inlined_call_operand.hbm [shape: f32[96,32], index: 3, kind: input, shape index: {}, may-alias: {1,2,3}]   ;;  %s2067_s4 = inlined_call_operand.hbm [shape: f32[3,32], index: 4, kind: input, shape index: {}]   ;;  %s2068_s5 = inlined_call_operand.hbm [shape: f32[64,32], index: 5, kind: output, shape index: {0}]   ;;  %s2069_s6 = inlined_call_operand.hbm [shape: f32[64,32], index: 6, kind: output, shape index: {1}]   ;;  %s2070_s7 = inlined_call_operand.hbm [shape: f32[64,32], index: 7, kind: output, shape index: {2}]  }
   0x1   :  { %2079 = sst [smem:[#allocation22_spill]] %s2064_s1 }
   0x2   :  { %2080 = sst [smem:[#allocation23_spill]] %s2066_s3 }
   0x3   :  { %13 = vsyncpa [#allocation3], 0 }
   0x4   :  { %15 = vsyncpa [#allocation3 + $0x1], 0 }
   0x5   :  { %16 = vsyncpa [#allocation6], 0 }
   0x6   :  { %17 = vsyncpa [#allocation9], 0 }
   0x7   :  { %18 = vsyncpa [#allocation4], 0 }
   0x8   :  { %20 = vsyncpa [#allocation4 + $0x1], 0 }
   0x9   :  { %21 = vsyncpa [#allocation13], 0 }
   0xa   :  { %23 = vsyncpa [#allocation13 + $0x1], 0  ;;  %s1600_s24 = smov 0   ;;  %s1602_s25 = smov 0  }
   0xb   :  { %s1604_s26 = smov 0   ;;  %s1606_s27 = smov 0  }
   0xc   :  { %s1608_s28 = smov 0   ;;  %s1610_s29 = smov 0  }
   0xd LB: > { %2081 = sst [smem:[#allocation20_spill]] %s1526_s24  ;;  %s1631_s30 = sadd.s32 4294967295, %s1546_s29   ;;  %s1546_s29 = sphi %s1610_s29, %s29_s29   ;;  %s1542_s28 = sphi %s1608_s28, %s2111_s28   ;;  %s1538_s27 = sphi %s1606_s27, %s2110_s27   ;;  %s1534_s26 = sphi %s1604_s26, %s2109_s26   ;;  %s1530_s25 = sphi %s1602_s25, %s2108_s25   ;;  %s1526_s24 = sphi %s1600_s24, %s2107_s24  }
   0xe   : > { %s2071_s8 = sadd.s32 4294967294, %s1546_s29   ;;  %p61_p0 = scmp.ne.s32.totalorder %s1530_s25, %s1526_s24 }
   0xf   : > { %p2073_p1 = scmp.eq.s32.totalorder %s1631_s30, 0  ;;  %p201_p3 = scmp.eq.s32.totalorder %s2071_s8, 3 }
  0x10   : > { %p993_p5 = scmp.ge.s32.totalorder %s1546_s29, 1  ;;  %p264_p7 = scmp.lt.s32.totalorder %s1546_s29, 5 }
  0x11   : > { %p1642_p4 = por %p2073_p1, %p61_p0  ;;  %p1647_p6 = por %p201_p3, %p61_p0 }
  0x12   : > { %p1652_p8 = pnand %p993_p5, %p264_p7  ;;  %s1548_s12 = smov [#allocation5]  }
  0x13   : > { %s2082_s9 = scalar_select %p1642_p4, 1, 0 }
  0x14   : > { %s2083_s10 = scalar_select %p1647_p6, 1, 0 }
  0x15   : > { %s2085_s11 = scalar_select %p1652_p8, 1, 0 }
  0x16   : > { %2084 = sst [smem:[#allocation21_spill]] %s2083_s10  ;;  %s279_s13 = sshll.u32 %s1548_s12, 4  ;;  %s1656_s13 = int_to_ptr.vmem [resolvable:$true] %s279_s13 }
  0x17   : > { %p1155_p9 = pneg %p1652_p8  ;;  %s2086_s3 = sld [smem:[#allocation23_spill]] }
  0x18   : > { %s1549_s18 = smov [#allocation8]   ;;  %s1674_s22 = scalar_lea.hbm %s2065_s2, 512 }
  0x19   : > { %p1667_p10 = pnand %p1155_p9, %p2073_p1  ;;  %s313_s19 = sshll.u32 %s1549_s18, 4  ;;  %s1676_s19 = int_to_ptr.vmem [resolvable:$true] %s313_s19 }
  0x1a   : > { %s2088_s1 = sld [smem:[#allocation22_spill]] }
  0x1b   : > { %s2087_s17 = scalar_select %p1667_p10, 1, 0 }
  0x1c   : > { %p1686_p12 = pneg %p1667_p10 }
  0x1d   : > { %s1663_s16 = scalar_lea.hbm %s2086_s3, 1024 }
  0x20   : > { %s1248_s14 = scalar_lea.hbm %s2088_s1, 512  ;;  %s1253_s21 = scalar_lea.hbm %s2088_s1, 1536 }
  0x21   : > { %p1249_p11 = scmp.ne.s32.totalorder %s2088_s1, %s1248_s14  ;;  %p1254_p3 = scmp.lt.u32.totalorder %s1253_s21, %s1248_s14 }
  0x22   : > { %p1255_p5 = scmp.lt.u32.totalorder %s1248_s14, %s2088_s1 }
  0x23   : > { %p1251_p13 = pnand %p1686_p12, %p1249_p11 }
  0x24   : > { %p1256_p7 = por %p1255_p5, %p1254_p3 }
  0x25   : > { %p1252_p0 = pneg %p1251_p13 }
  0x27   : > { %p1257_p9 = pnand %p1256_p7, %p1252_p0 }
  0x29   : > { %1260 = shalt.err (!%p1257_p9)
}
  0x2a   : > { %s1261_s8 = scalar_lea.vmem %s1656_s13, 512  ;;  %p1269_p2 = scmp.lt.s32.totalorder %s1656_s13, %s1656_s13 }
  0x2b   : > { %p1262_p1 = scmp.ne.s32.totalorder %s1656_s13, %s1261_s8  ;;  %p1270_p6 = scmp.lt.s32.totalorder %s1261_s8, %s1261_s8 }
  0x2d   : > { %p1264_p11 = pnand %p1262_p1, %p1686_p12  ;;  %p1271_p4 = por %p1270_p6, %p1269_p2 }
  0x2f   : > { %p1265_p13 = pneg %p1264_p11 }
  0x31   : > { %p1272_p8 = pnand %p1271_p4, %p1265_p13 }
  0x33   : > { %1275 = shalt.err (!%p1272_p8)
}
  0x34   : > { %s1550_s15 = smov 128   ;;  %s1551_s14 = smov 8  }
  0x35   : > { %1158 = dma.hbm_to_vmem [thread:$0]  (!%p1667_p10), %s2088_s1, 512, %s1656_s13, [#allocation6], %s1550_s15, %s1550_s15, %s1551_s14  }
  0x36   : > { %s1306_s12 = scalar_lea.hbm %s2086_s3, 1536  ;;  %p1282_p6 = scmp.lt.u32.totalorder %s1663_s16, %s2086_s3 }
  0x37   : > { %p1277_p1 = scmp.ne.s32.totalorder %s1663_s16, %s1306_s12  ;;  %p1283_p8 = scmp.lt.u32.totalorder %s1306_s12, %s1306_s12 }
  0x38   : > { %p1285_p3 = scmp.lt.u32.totalorder %s1306_s12, %s1663_s16 }
  0x39   : > { %p1279_p2 = pnand %p1277_p1, %p1686_p12  ;;  %p1284_p0 = por %p1283_p8, %p1282_p6 }
  0x3b   : > { %p1280_p4 = pneg %p1279_p2  ;;  %p1286_p5 = por %p1285_p3, %p1284_p0 }
  0x3d   : > { %p1287_p7 = pnand %p1286_p5, %p1280_p4 }
  0x3f   : > { %1290 = shalt.err (!%p1287_p7)
}
  0x40   : > { %s1291_s13 = scalar_lea.vmem %s1676_s19, 512  ;;  %p1299_p1 = scmp.lt.s32.totalorder %s1676_s19, %s1676_s19 }
  0x41   : > { %p1292_p9 = scmp.ne.s32.totalorder %s1676_s19, %s1291_s13  ;;  %p1300_p2 = scmp.lt.s32.totalorder %s1291_s13, %s1291_s13 }
  0x43   : > { %p1294_p11 = pnand %p1292_p9, %p1686_p12  ;;  %p1301_p10 = por %p1300_p2, %p1299_p1 }
  0x45   : > { %p1295_p13 = pneg %p1294_p11 }
  0x47   : > { %p1302_p6 = pnand %p1301_p10, %p1295_p13 }
  0x49   : > { %1305 = shalt.err (!%p1302_p6)
}
  0x4a   : > { %p2090_p8 = scmp.ne.s32.totalorder %s2087_s17, 0  ;;  %s1552_s24 = smov [#allocation7]  }
  0x4b   : > { %s296_s18 = sshll.u32 %s1552_s24, 4  ;;  %s1553_s20 = smov [#allocation10]   ;;  %s297_s18 = int_to_ptr.vmem [resolvable:$true] %s296_s18 }
  0x4c   : > { %1164 = dma.hbm_to_vmem [thread:$0]  (!%p2090_p8), %s1663_s16, 512, %s1676_s19, [#allocation9], %s1550_s15, %s1550_s15, %s1551_s14  }
  0x4d   : > { %s329_s21 = sshll.u32 %s1553_s20, 4  ;;  %s1337_s8 = scalar_lea.hbm %s2065_s2, 1024  ;;  %s1737_s21 = int_to_ptr.vmem [resolvable:$true] %s329_s21 }
  0x4e   : > { %p1308_p10 = scmp.ne.s32.totalorder %s1674_s22, %s1337_s8  ;;  %s1312_s3 = scalar_lea.hbm %s2065_s2, 1536 }
  0x4f   : > { %p1313_p3 = scmp.lt.u32.totalorder %s1674_s22, %s2065_s2  ;;  %p1314_p5 = scmp.lt.u32.totalorder %s1312_s3, %s1337_s8 }
  0x50   : > { %p1310_p4 = pnand %p1308_p10, %p1686_p12  ;;  %p1316_p9 = scmp.lt.u32.totalorder %s1337_s8, %s1674_s22 }
  0x51   : > { %p1315_p7 = por %p1314_p5, %p1313_p3 }
  0x52   : > { %p1311_p0 = pneg %p1310_p4 }
  0x53   : > { %p1317_p11 = por %p1316_p9, %p1315_p7 }
  0x55   : > { %p1318_p13 = pnand %p1317_p11, %p1311_p0 }
  0x57   : > { %1321 = shalt.err (!%p1318_p13)
}
  0x58   : > { %s1322_s24 = scalar_lea.vmem %s297_s18, 512  ;;  %p1330_p10 = scmp.lt.s32.totalorder %s297_s18, %s297_s18 }
  0x59   : > { %p1323_p1 = scmp.ne.s32.totalorder %s297_s18, %s1322_s24  ;;  %p1331_p4 = scmp.lt.s32.totalorder %s1322_s24, %s1322_s24 }
  0x5b   : > { %p1325_p2 = pnand %p1323_p1, %p1686_p12  ;;  %p1332_p8 = por %p1331_p4, %p1330_p10 }
  0x5d   : > { %p1326_p6 = pneg %p1325_p2 }
  0x5f   : > { %p1333_p3 = pnand %p1332_p8, %p1326_p6 }
  0x61   : > { %1336 = shalt.err (!%p1333_p3)
}
  0x62   : > { %p2091_p5 = scmp.ne.s32.totalorder %s2087_s17, 0  ;;  %s1338_s20 = scalar_lea.hbm %s2067_s4, 64 }
  0x63   : > { %p1339_p0 = scmp.ne.s32.totalorder %s2067_s4, %s1338_s20  ;;  %p1345_p9 = scmp.lt.u32.totalorder %s1338_s20, %s2067_s4 }
  0x64   : > { %1161 = dma.hbm_to_vmem [thread:$0]  (!%p2091_p5), %s1674_s22, 512, %s297_s18, [#allocation6], %s1550_s15, %s1550_s15, %s1551_s14  }
  0x65   : > { %p1341_p7 = pnand %p1339_p0, %p1686_p12 }
  0x67   : > { %p1342_p8 = pneg %p1341_p7 }
  0x69   : > { %p1347_p11 = pnand %p1345_p9, %p1342_p8 }
  0x6b   : > { %1350 = shalt.err (!%p1347_p11)
}
  0x6c   : > { %s1351_s22 = scalar_lea.vmem %s1737_s21, 64  ;;  %p1359_p6 = scmp.lt.s32.totalorder %s1737_s21, %s1737_s21 }
  0x6d   : > { %p1352_p13 = scmp.ne.s32.totalorder %s1737_s21, %s1351_s22  ;;  %p1360_p10 = scmp.lt.s32.totalorder %s1351_s22, %s1351_s22 }
  0x6f   : > { %p1354_p1 = pnand %p1352_p13, %p1686_p12  ;;  %p1361_p4 = por %p1360_p10, %p1359_p6 }
  0x71   : > { %p1355_p2 = pneg %p1354_p1 }
  0x73   : > { %p1362_p3 = pnand %p1361_p4, %p1355_p2 }
  0x75   : > { %1365 = shalt.err (!%p1362_p3)
}
  0x76   : > { %1167 = dma.hbm_to_vmem [thread:$0]  (!%p2091_p5), %s2067_s4, 64, %s1737_s21, [#allocation9]  }
  0x77   : > { %s41_s10 = sadd.s32 1, %s1542_s28  ;;  %s48_s19 = sadd.s32 1, %s1534_s26 }
  0x78   : > { %p43_p12 = scmp.ge.s32.totalorder %s41_s10, 4  ;;  %p55_p0 = scmp.ne.s32.totalorder %s1534_s26, %s1530_s25 }
  0x79   : > { %p56_p7 = scmp.eq.s32.totalorder %s1546_s29, 0  ;;  %p1186_p8 = scmp.lt.s32.totalorder %s1546_s29, 4 }
  0x7a   : > { %s2113_s10 = smov (%p43_p12, %s41_s10), 0  ;;  %p2092_p11 = scmp.eq.s32.totalorder %s1631_s30, 3 }
  0x7b   : > { %p57_p9 = por %p56_p7, %p55_p0  ;;  %s45_s24 = ssub.s32 %s1542_s28, %s2113_s10 }
  0x7c   : > { %p1794_p13 = por %p2092_p11, %p55_p0  ;;  %s340_s1 = sand.u32 1, %s1534_s26  }
  0x7d   : > { %p46_p1 = scmp.eq.s32.totalorder %s45_s24, 0  ;;  %s999_s21 = sshll.u32 %s340_s1, 4 }
  0x7e   : > { %s1040_s3 = sshll.u32 %s1542_s28, 8  ;;  %s344_s13 = scalar_lea.vmem [#allocation2], %s999_s21 }
  0x7f   : > { %s1803_s20 = scalar_select %p46_p1, %s1534_s26, %s48_s19  }
  0x80   : > { %s1808_s8 = scalar_lea.hbm %s2063_s0, %s1040_s3  ;;  %s351_s22 = sshll.u32 %s344_s13, 4  ;;  %s1816_s22 = int_to_ptr.vmem [resolvable:$true] %s351_s22 }
  0x81   : > { %p1812_p5 = pnand %p1186_p8, %p57_p9  ;;  %s1818_s16 = scalar_lea.sflag [#allocation3], %s340_s1 }
  0x82   : > { %s1366_s19 = scalar_lea.hbm %s1808_s8, 256  ;;  %s1371_s3 = scalar_lea.hbm %s2063_s0, 1024 }
  0x83   : > { %p1367_p2 = scmp.ne.s32.totalorder %s1808_s8, %s1366_s19  ;;  %p1368_p6 = pneg %p1812_p5 }
  0x84   : > { %p1372_p3 = scmp.lt.u32.totalorder %s1808_s8, %s2063_s0  ;;  %p1373_p12 = scmp.lt.u32.totalorder %s1371_s3, %s1366_s19 }
  0x85   : > { %p1369_p10 = pnand %p1368_p6, %p1367_p2  ;;  %p1375_p7 = scmp.lt.u32.totalorder %s1366_s19, %s1808_s8 }
  0x86   : > { %p1374_p0 = por %p1373_p12, %p1372_p3 }
  0x87   : > { %p1370_p4 = pneg %p1369_p10 }
  0x88   : > { %p1376_p8 = por %p1375_p7, %p1374_p0 }
  0x8a   : > { %p1377_p9 = pnand %p1376_p8, %p1370_p4 }
  0x8c   : > { %1380 = shalt.err (!%p1377_p9)
}
  0x8d   : > { %s1381_s1 = scalar_lea.vmem %s1816_s22, 256  ;;  %s1554_s13 = smov [#allocation2]  }
  0x8e   : > { %p1382_p11 = scmp.ne.s32.totalorder %s1816_s22, %s1381_s1  ;;  %s1386_s24 = sshll.u32 %s1554_s13, 4  ;;  %s1387_s24 = int_to_ptr.vmem [resolvable:$false] %s1386_s24 }
  0x8f   : > { %s1388_s21 = scalar_lea.vmem %s1387_s24, 512  ;;  %p1389_p10 = scmp.lt.s32.totalorder %s1816_s22, %s1387_s24 }
  0x90   : > { %p1384_p1 = pnand %p1382_p11, %p1368_p6  ;;  %p1390_p3 = scmp.lt.s32.totalorder %s1388_s21, %s1381_s1 }
  0x92   : > { %p1385_p2 = pneg %p1384_p1  ;;  %p1391_p12 = por %p1390_p3, %p1389_p10 }
  0x94   : > { %p1392_p0 = pnand %p1391_p12, %p1385_p2 }
  0x96   : > { %1395 = shalt.err (!%p1392_p0)
}
  0x97   : > { %1171 = dma.hbm_to_vmem [thread:$0]  (!%p1812_p5), %s1808_s8, 256, %s1816_s22, %s1818_s16, %s1550_s15, %s1550_s15, %s1551_s14  }
  0x98   : > { %p2095_p6 = scmp.ne.s32.totalorder %s2085_s11, 0 }
  0x99   : > { %s1852_s19 = sand.u32 (!%p2095_p6), 1, %s1530_s25   ;;  %p2096_p4 = scmp.ne.s32.totalorder (!%p2095_p6), %s2082_s9, 0 }
  0x9a   : > { %363 = sbr.rel (%p2095_p6) target bundleno = 466 (0x1d2), region = 40  ;;  %s1855_s3 = sshll.u32 (!%p2095_p6), %s1852_s19, 4 }
  0x9b   : > { %s366_s18 = scalar_lea.sflag (!%p2095_p6), [#allocation3], %s1852_s19  ;;  %s369_s23 = scalar_lea.vmem (!%p2095_p6), [#allocation2], %s1855_s3 }
  0xa1   : > { %1505 = dma.done.wait (%p2096_p4), %s366_s18, 256  }
  0xa2   : > { %1507 = vsyncadd (%p2096_p4), %s366_s18, 4294967040  ;;  %p2097_p5 = scmp.eq.s32.totalorder %s1631_s30, 0 }
  0xa4   : > { %1509 = dma.done.wait (%p2097_p5), [#allocation6], 1024   ;;  %p2098_p7 = pmov %p2097_p5 }
  0xa5   : > { %p2099_p8 = pmov %p2097_p5 }
  0xa6   : > { %1511 = vsyncadd (%p2098_p7), [#allocation6], 4294966272 }
  0xa7   : > { %1513 = dma.done.wait (%p2099_p8), [#allocation9], 576   ;;  %p2100_p9 = pmov %p2097_p5 }
  0xa8   : > { %vm446_vm0 = vcmask 261120   ;;  %v438_v1 = vld [vmem:[#allocation5] sm:$0xff]  ;;  %v439_v2 = vld [vmem:[#allocation5 + $0x8] sm:$0xff]  ;;  %v440_v3 = vld [vmem:[#allocation5 + $0x10] sm:$0xff]  ;;  %v442_v21 = vlaneseq  ;;  %s411_s9 = scalar_lea.vmem [#allocation11], %s1855_s3  ;;  %s418_s15 = scalar_lea.vmem [#allocation12], %s1855_s3 }
  0xa9   : > { %1515 = vsyncadd (%p2100_p9), [#allocation9], 4294966720  ;;  %v1095_v4 = vpack.c.bf16 %v439_v2, %v438_v1  ;;  %v441_v5 = vld [vmem:[#allocation5 + $0x18] sm:$0xff]  ;;  %v542_v6 = vld [vmem:[#allocation7] sm:$0xff]  ;;  %s761_s11 = sshll.u32 %s411_s9, 4  ;;  %s778_s14 = sshll.u32 %s418_s15, 4  ;;  %s1921_s11 = int_to_ptr.vmem [resolvable:$true] %s761_s11  ;;  %s1926_s14 = int_to_ptr.vmem [resolvable:$true] %s778_s14 }
  0xaa   : > { %vm1873_vm1 = vmpackc.low %vm446_vm0, %vm446_vm0  ;;  %v543_v7 = vld [vmem:[#allocation7 + $0x8] sm:$0xff]  ;;  %v1101_v8 = vpack.c.bf16 %v441_v5, %v440_v3  ;;  %v435_v10 = vld [vmem:[%s369_s23] sm:$0xff]  ;;  %v1911_v22 = vshrl.u32 %v442_v21, 7  ;;  %s1924_s8 = sshll.u32 %s1538_s27, 8  ;;  %s741_s22 = sand.u32 1, %s1631_s30  }
  0xab   : > { %v1107_v9 = vpack.c.bf16 %v543_v7, %v542_v6  ;;  %1097 = vmatprep.subr.msk.bf16.mxu0 %vm1873_vm1, %v1095_v4  ;;  %1070 = vmatprep.mubr.msk.f32.mxu0 %vm446_vm0, %v435_v10  ;;  %v544_v11 = vld [vmem:[#allocation7 + $0x10] sm:$0xff]  ;;  %v545_v12 = vld [vmem:[#allocation7 + $0x18] sm:$0xff]  ;;  %v639_v14 = vld [vmem:[#allocation8] sm:$0xff]  ;;  %s1933_s27 = scalar_lea.hbm %s2068_s5, %s1924_s8  ;;  %s1940_s24 = scalar_lea.hbm %s2069_s6, %s1924_s8 }
  0xac   : > { %1100 = vmatpush3.bf16.xpose.msk.msra.mxu0 %vm1873_vm1, %v1095_v4  ;;  %v1113_v13 = vpack.c.bf16 %v545_v12, %v544_v11  ;;  %v640_v15 = vld [vmem:[#allocation8 + $0x8] sm:$0xff]  ;;  %1081 = vmatprep.mubr.msk.f32.mxu1 %vm446_vm0, %v435_v10  ;;  %v641_v17 = vld [vmem:[#allocation8 + $0x10] sm:$0xff]  ;;  %v642_v18 = vld [vmem:[#allocation8 + $0x18] sm:$0xff]  ;;  %v444_v23 = vsub.s32 0, %v1911_v22  ;;  %v548_v25 = vsub.s32 1, %v1911_v22  ;;  %s737_s21 = scalar_lea.sflag [#allocation4], %s1852_s19 }
  0xad   : > { %1109 = vmatprep.subr.msk.bf16.mxu1 %vm1873_vm1, %v1107_v9  ;;  %1103 = vmatprep.subr.msk.bf16.mxu0 %vm1873_vm1, %v1101_v8  ;;  %v1119_v16 = vpack.c.bf16 %v640_v15, %v639_v14  ;;  %v436_v19 = vld [vmem:[%s369_s23 + $0x8] sm:$0xff]  ;;  %v1125_v20 = vpack.c.bf16 %v642_v18, %v641_v17  ;;  %v1914_v24 = vld [vmem:[#allocation10] sm:$0x7]  ;;  %s1396_s18 = scalar_lea.vmem %s1921_s11, 256  ;;  %s1555_s23 = smov [#allocation11]  }
  0xae   : > { %1112 = vmatpush3.bf16.xpose.msk.msra.mxu1 %vm1873_vm1, %v1107_v9  ;;  %v445_v26 = vrot.slane %v1914_v24, %v444_v23  ;;  %v549_v27 = vrot.slane %v1914_v24, %v548_v25  ;;  %p1397_p11 = scmp.ne.s32.totalorder %s1921_s11, %s1396_s18  ;;  %s1400_s16 = sshll.u32 %s1555_s23, 4  ;;  %s1401_s16 = int_to_ptr.vmem [resolvable:$false] %s1400_s16 }
  0xaf   : > { %1115 = vmatprep.subr.msk.bf16.mxu1 %vm1873_vm1, %v1113_v13  ;;  %s1402_s12 = scalar_lea.vmem %s1401_s16, 512  ;;  %p1403_p10 = scmp.lt.s32.totalorder %s1921_s11, %s1401_s16 }
  0xb0   : > { %p1398_p1 = pnand %p1397_p11, %p1794_p13  ;;  %p1404_p3 = scmp.lt.s32.totalorder %s1402_s12, %s1396_s18 }
  0xb2   : > { %p1399_p2 = pneg %p1398_p1  ;;  %p1405_p12 = por %p1404_p3, %p1403_p10 }
  0xb4   : > { %1106 = vmatpush3.bf16.xpose.msk.msra.mxu0 %vm1873_vm1, %v1101_v8  ;;  %p1406_p0 = pnand %p1405_p12, %p1399_p2 }
  0xb5   : > { %1121 = vmatprep.subr.msk.bf16.mxu0 %vm1873_vm1, %v1119_v16 }
  0xb6   : > { %1118 = vmatpush3.bf16.xpose.msk.msra.mxu1 %vm1873_vm1, %v1113_v13 }
  0xbb   : > { %1071 = vmatmul.mubr.msk.f32.vlgmr.msra.gmra.mrb[0].mxu0 %vm446_vm0, %v436_v19 }
  0xbc   : > { %1124 = vmatpush3.bf16.xpose.msk.msra.mxu0 %vm1873_vm1, %v1119_v16  ;;  %1092 = vmatprep.mubr.msk.f32.mxu0 %vm446_vm0, %v435_v10 }
  0xbd   : > { %1082 = vmatmul.mubr.msk.f32.vlgmr.msra.gmra.mrb[0].mxu1 %vm446_vm0, %v436_v19  ;;  %1127 = vmatprep.subr.msk.bf16.mxu0 %vm1873_vm1, %v1125_v20 }
  0xc4   : > { %1130 = vmatpush3.bf16.xpose.msk.msra.mxu0 %vm1873_vm1, %v1125_v20 }
  0xcb   : > { %1093 = vmatmul.mubr.msk.f32.vlgmr.msra.gmra.mrb[2].mxu0 %vm446_vm0, %v436_v19 }
 0x18e   : > { %v1072_v28 = vpop.f32.mrb[0].mxu0 }
 0x18f   : > { %v537_v29 = vadd.f32 %v1072_v28, %v445_v26  ;;  %v531_v30 = vpop.f32.mrb[1].mxu0 }
 0x190   : > { %v1083_v31 = vpop.f32.mrb[0].mxu1  ;;  %v532_v32 = vadd.f32 %v531_v30, %v445_v26 }
 0x191   : > { %v634_v33 = vadd.f32 %v1083_v31, %v549_v27  ;;  %v628_v34 = vpop.f32.mrb[1].mxu1  ;;  %541 = vst.msk [vmem:[%s411_s9 + $0x8] sm:$0xff] %vm446_vm0, %v537_v29 }
 0x192   : > { %v629_v35 = vadd.f32 %v628_v34, %v549_v27  ;;  %540 = vst.msk [vmem:[%s411_s9] sm:$0xff] %vm446_vm0, %v532_v32 }
 0x193   : > { %638 = vst.msk [vmem:[%s418_s15 + $0x8] sm:$0xff] %vm446_vm0, %v634_v33 }
 0x194   : > { %637 = vst.msk [vmem:[%s418_s15] sm:$0xff] %vm446_vm0, %v629_v35 }
 0x195   : > { %1409 = shalt.err (!%p1406_p0)
}
 0x196   : > { %s1410_s9 = scalar_lea.hbm %s1933_s27, 256  ;;  %s1414_s13 = scalar_lea.hbm %s2068_s5, 1024 }
 0x197   : > { %p1411_p6 = scmp.ne.s32.totalorder %s1933_s27, %s1410_s9  ;;  %p1415_p7 = scmp.lt.u32.totalorder %s1933_s27, %s2068_s5 }
 0x198   : > { %p1416_p8 = scmp.lt.u32.totalorder %s1414_s13, %s1410_s9  ;;  %p1418_p11 = scmp.lt.u32.totalorder %s1410_s9, %s1933_s27 }
 0x199   : > { %p1412_p4 = pnand %p1411_p6, %p1794_p13 }
 0x19a   : > { %p1417_p9 = por %p1416_p8, %p1415_p7 }
 0x19b   : > { %p1413_p5 = pneg %p1412_p4 }
 0x19c   : > { %p1419_p1 = por %p1418_p11, %p1417_p9 }
 0x19e   : > { %p1420_p2 = pnand %p1419_p1, %p1413_p5 }
 0x1a0   : > { %1423 = shalt.err (!%p1420_p2)
}
 0x1a1   : > { %s1556_s18 = smov 128   ;;  %s1557_s12 = smov 8  }
 0x1a2   : > { %1149 = dma.vmem_to_hbm [thread:$0]  (%p1794_p13), %s1921_s11, 256, %s1933_s27, %s737_s21, %s1556_s18, %s1556_s18, %s1557_s12  }
 0x1a3   : > { %s1974_s9 = scalar_lea.sflag [#allocation13], %s741_s22  ;;  %s1424_s15 = scalar_lea.vmem %s1926_s14, 256 }
 0x1a4   : > { %p1425_p10 = scmp.ne.s32.totalorder %s1926_s14, %s1424_s15  ;;  %s1558_s1 = smov [#allocation12]  }
 0x1a5   : > { %s1428_s13 = sshll.u32 %s1558_s1, 4  ;;  %s1429_s13 = int_to_ptr.vmem [resolvable:$false] %s1428_s13 }
 0x1a6   : > { %p1426_p3 = pnand %p1425_p10, %p1794_p13  ;;  %s1430_s23 = scalar_lea.vmem %s1429_s13, 512 }
 0x1a7   : > { %p1431_p0 = scmp.lt.s32.totalorder %s1926_s14, %s1429_s13  ;;  %p1432_p6 = scmp.lt.s32.totalorder %s1430_s23, %s1424_s15 }
 0x1a8   : > { %p1427_p12 = pneg %p1426_p3 }
 0x1a9   : > { %p1433_p4 = por %p1432_p6, %p1431_p0 }
 0x1ab   : > { %p1434_p5 = pnand %p1433_p4, %p1427_p12 }
 0x1ad   : > { %1437 = shalt.err (!%p1434_p5)
}
 0x1ae   : > { %s1438_s30 = scalar_lea.hbm %s1940_s24, 256  ;;  %s1442_s22 = scalar_lea.hbm %s2069_s6, 1024 }
 0x1af   : > { %p1439_p7 = scmp.ne.s32.totalorder %s1940_s24, %s1438_s30  ;;  %p1443_p11 = scmp.lt.u32.totalorder %s1940_s24, %s2069_s6 }
 0x1b0   : > { %p1444_p1 = scmp.lt.u32.totalorder %s1442_s22, %s1438_s30  ;;  %p1446_p10 = scmp.lt.u32.totalorder %s1438_s30, %s1940_s24 }
 0x1b1   : > { %p1440_p8 = pnand %p1439_p7, %p1794_p13 }
 0x1b2   : > { %p1445_p2 = por %p1444_p1, %p1443_p11 }
 0x1b3   : > { %p1441_p9 = pneg %p1440_p8 }
 0x1b4   : > { %p1447_p3 = por %p1446_p10, %p1445_p2 }
 0x1b6   : > { %p1448_p12 = pnand %p1447_p3, %p1441_p9 }
 0x1b8   : > { %1451 = shalt.err (!%p1448_p12)
}
 0x1b9   : > { %1150 = dma.vmem_to_hbm [thread:$0]  (%p1794_p13), %s1926_s14, 256, %s1940_s24, %s1974_s9, %s1556_s18, %s1556_s18, %s1557_s12   ;;  %v645_v36 = vsub.s32 2, %v1911_v22  ;;  %v1094_v38 = vpop.f32.mrb[2].mxu0 }
 0x1ba   : > { %s425_s16 = scalar_lea.vmem [#allocation14], %s1855_s3  ;;  %v725_v40 = vpop.f32.mrb[3].mxu0  ;;  %s2010_s23 = scalar_lea.hbm %s2070_s7, %s1924_s8 }
 0x1bb   : > { %v646_v37 = vrot.slane %v1914_v24, %v645_v36  ;;  %s795_s15 = sshll.u32 %s425_s16, 4  ;;  %s1559_s14 = smov [#allocation14]   ;;  %s2004_s15 = int_to_ptr.vmem [resolvable:$true] %s795_s15 }
 0x1bc   : > { %s1452_s3 = scalar_lea.vmem %s2004_s15, 256  ;;  %s1456_s24 = sshll.u32 %s1559_s14, 4  ;;  %s1457_s24 = int_to_ptr.vmem [resolvable:$false] %s1456_s24 }
 0x1bd   : > { %v731_v39 = vadd.f32 %v1094_v38, %v646_v37  ;;  %v726_v41 = vadd.f32 %v725_v40, %v646_v37  ;;  %p1453_p0 = scmp.ne.s32.totalorder %s2004_s15, %s1452_s3  ;;  %s1458_s30 = scalar_lea.vmem %s1457_s24, 512 }
 0x1be   : > { %p1459_p5 = scmp.lt.s32.totalorder %s2004_s15, %s1457_s24  ;;  %p1460_p7 = scmp.lt.s32.totalorder %s1458_s30, %s1452_s3 }
 0x1bf   : > { %735 = vst.msk [vmem:[%s425_s16 + $0x8] sm:$0xff] %vm446_vm0, %v731_v39  ;;  %734 = vst.msk [vmem:[%s425_s16] sm:$0xff] %vm446_vm0, %v726_v41  ;;  %p1454_p6 = pnand %p1453_p0, %p1794_p13 }
 0x1c0   : > { %p1461_p8 = por %p1460_p7, %p1459_p5 }
 0x1c1   : > { %p1455_p4 = pneg %p1454_p6 }
 0x1c3   : > { %p1462_p9 = pnand %p1461_p8, %p1455_p4 }
 0x1c5   : > { %1465 = shalt.err (!%p1462_p9)
}
 0x1c6   : > { %s1466_s8 = scalar_lea.hbm %s2010_s23, 256  ;;  %s1470_s22 = scalar_lea.hbm %s2070_s7, 1024 }
 0x1c7   : > { %p1467_p11 = scmp.ne.s32.totalorder %s2010_s23, %s1466_s8  ;;  %p1471_p10 = scmp.lt.u32.totalorder %s2010_s23, %s2070_s7 }
 0x1c8   : > { %p1472_p3 = scmp.lt.u32.totalorder %s1470_s22, %s1466_s8  ;;  %p1474_p0 = scmp.lt.u32.totalorder %s1466_s8, %s2010_s23 }
 0x1c9   : > { %p1468_p1 = pnand %p1467_p11, %p1794_p13 }
 0x1ca   : > { %p1473_p12 = por %p1472_p3, %p1471_p10 }
 0x1cb   : > { %p1469_p2 = pneg %p1468_p1 }
 0x1cc   : > { %p1475_p6 = por %p1474_p0, %p1473_p12 }
 0x1ce   : > { %p1476_p4 = pnand %p1475_p6, %p1469_p2 }
 0x1d0   : > { %1479 = shalt.err (!%p1476_p4)
}
 0x1d1   : > { %1151 = dma.vmem_to_hbm [thread:$0]  (%p1794_p13), %s2004_s15, 256, %s2010_s23, %s1974_s9, %s1556_s18, %s1556_s18, %s1557_s12  }
 0x1d2 PF: > { %s2103_s16 = sld [smem:[#allocation20_spill]]  ;;  %s2104_s1 = sld [smem:[#allocation21_spill]] }
 0x1d3   : > { %p1191_p5 = scmp.ge.s32.totalorder %s1546_s29, 2 }
 0x1d8   : > { %s810_s13 = sand.u32 1, %s2103_s16   ;;  %p2105_p7 = scmp.ne.s32.totalorder %s2104_s1, 0 }
 0x1d9   : > { %s811_s3 = scalar_lea.sflag [#allocation4], %s810_s13 }
 0x1da   : > { %p1173_p8 = pnand %p1191_p5, %p2105_p7 }
 0x1dc   : > { %1517 = dma.done.wait (!%p1173_p8), %s811_s3, 256  }
 0x1dd   : > { %1519 = vsyncadd (!%p1173_p8), %s811_s3, 4294967040  ;;  %s2106_s17 = sadd.s32 4294967294, %s1546_s29  }
 0x1de   : > { %s819_s14 = sand.u32 1, %s2106_s17  }
 0x1df   : > { %s820_s24 = scalar_lea.sflag [#allocation13], %s819_s14 }
 0x1e0   : > { %1521 = dma.done.wait (!%p1173_p8), %s820_s24, 512  }
 0x1e1   : > { %1523 = vsyncadd (!%p1173_p8), %s820_s24, 4294966784  ;;  %s29_s29 = sadd.s32 1, %s1546_s29   ;;  %s2107_s24 = smov %s1530_s25 }
 0x1e2   : > { %p26_p13 = scmp.ge.s32.totalorder %s29_s29, 6   ;;  %s2108_s25 = smov %s1534_s26 }
 0x1e3   : > { %s2109_s26 = smov %s1803_s20  ;;  %s2110_s27 = smov %s1542_s28 }
 0x1e4   : > { %s2111_s28 = smov %s2113_s10  ;;  %28 = sbr.rel (!%p26_p13) target bundleno = 13 (0xd), region = 137 }
 0x1eb   :  { %834 = vsyncpa [#allocation3], 1 }
 0x1ec   :  { %836 = vsyncpa [#allocation3 + $0x1], 1 }
 0x1ed   :  { %837 = vsyncpa [#allocation6], 1 }
 0x1ee   :  { %838 = vsyncpa [#allocation9], 1 }
 0x1ef   :  { %839 = vsyncpa [#allocation4], 1 }
 0x1f0   :  { %841 = vsyncpa [#allocation4 + $0x1], 1 }
 0x1f1   :  { %842 = vsyncpa [#allocation13], 1 }
 0x1f2   :  { %844 = vsyncpa [#allocation13 + $0x1], 1 }

// kernel: plain_mha_forward.4
= control target key start
LH: loop header
LB: loop body
LE: loop exit
PB: predicated region body
PF: predicated region fallthrough
CT: control target
= control target key end

     0   :  { %s2321_s0 = inlined_call_operand.hbm [shape: f32[2,32,32], index: 0, kind: input, shape index: {}]   ;;  %s2322_s1 = inlined_call_operand.hbm [shape: f32[2,32,32], index: 1, kind: input, shape index: {}]   ;;  %s2323_s2 = inlined_call_operand.hbm [shape: f32[2,32,32], index: 2, kind: input, shape index: {}]   ;;  %s2324_s3 = inlined_call_operand.hbm [shape: f32[2,32,32], index: 3, kind: output, shape index: {}]  }
   0x1   :  { %2352 = sst [smem:[#allocation31_spill]] %s2322_s1 }
   0x2   :  { %2353 = sst [smem:[#allocation32_spill]] %s2324_s3 }
   0x3   :  { %8 = vsyncpa [#allocation6], 0 }
   0x4   :  { %10 = vsyncpa [#allocation6 + $0x1], 0 }
   0x5   :  { %11 = vsyncpa [#allocation9], 0 }
   0x6   :  { %13 = vsyncpa [#allocation9 + $0x1], 0 }
   0x7   :  { %14 = vsyncpa [#allocation7], 0 }
   0x8   :  { %16 = vsyncpa [#allocation7 + $0x1], 0  ;;  %s1837_s12 = smov 0   ;;  %s1839_s13 = smov 0  }
   0x9   :  { %s1841_s14 = smov 0   ;;  %s1843_s15 = smov 0  }
   0xa   :  { %s1845_s16 = smov 0   ;;  %s1847_s17 = smov 0  }
   0xb   :  { %s1849_s18 = smov 0   ;;  %s1851_s19 = smov 0  }
   0xc   :  { %s1853_s20 = smov 0   ;;  %s1855_s21 = smov 0  }
   0xd   :  { %s1857_s22 = smov 0   ;;  %s1859_s23 = smov 0  }
   0xe   :  { %s1861_s24 = smov 0  }
   0xf LB: > { %2354 = sst [smem:[#allocation15_spill]] %s1755_s13  ;;  %s1901_s25 = sadd.s32 4294967295, %s1799_s24   ;;  %s1799_s24 = sphi %s1861_s24, %s22_s24   ;;  %s1795_s23 = sphi %s1859_s23, %s2428_s23   ;;  %s1791_s22 = sphi %s1857_s22, %s2427_s22   ;;  %s1787_s21 = sphi %s1855_s21, %s2426_s21   ;;  %s1783_s20 = sphi %s1853_s20, %s2425_s20   ;;  %s1779_s19 = sphi %s1851_s19, %s2424_s19   ;;  %s1775_s18 = sphi %s1849_s18, %s2423_s18   ;;  %s1771_s17 = sphi %s1847_s17, %s2422_s17   ;;  %s1767_s16 = sphi %s1845_s16, %s2421_s16   ;;  %s1763_s15 = sphi %s1843_s15, %s2415_s15   ;;  %s1759_s14 = sphi %s1841_s14, %s2420_s14   ;;  %s1755_s13 = sphi %s1839_s13, %s2419_s13   ;;  %s1751_s12 = sphi %s1837_s12, %s2414_s12  }
  0x10   : > { %2355 = sst [smem:[#allocation16_spill]] %s1763_s15  ;;  %s37_s26 = sadd.s32 1, %s1787_s21 }
  0x11   : > { %2356 = sst [smem:[#allocation17_spill]] %s1767_s16  ;;  %p1904_p0 = scmp.ge.s32.totalorder %s37_s26, 4 }
  0x12   : > { %2357 = sst [smem:[#allocation18_spill]] %s1775_s18  ;;  %p2330_p1 = scmp.eq.s32.totalorder %s1799_s24, 0 }
  0x13   : > { %2358 = sst [smem:[#allocation19_spill]] %s1779_s19  ;;  %p2329_p2 = scmp.eq.s32.totalorder %s1901_s25, 0 }
  0x14   : > { %2359 = sst [smem:[#allocation20_spill]] %s1783_s20  ;;  %s2430_s26 = smov (%p1904_p0, %s37_s26), 0 }
  0x15   : > { %2360 = sst [smem:[#allocation21_spill]] %s1901_s25  ;;  %p96_p3 = scmp.ne.s32.totalorder %s1759_s14, %s1755_s13 }
  0x16   : > { %p102_p4 = scmp.ne.s32.totalorder %s1755_s13, %s1751_s12  ;;  %p2328_p7 = scmp.lt.s32.totalorder %s1799_s24, 32 }
  0x17   : > { %p1921_p5 = por %p96_p3, %p2330_p1  ;;  %s2325_s5 = sshll.u32 %s1795_s23, 2 }
  0x18   : > { %p1927_p6 = por %p102_p4, %p2329_p2  ;;  %s207_s6 = sand.u32 1, %s1799_s24  }
  0x19   : > { %s209_s7 = sand.u32 1, %s1759_s14   ;;  %s1940_s9 = sadd.s32 %s1787_s21, %s2325_s5 }
  0x1a   : > { %s2363_s4 = scalar_select %p1927_p6, 1, 0 }
  0x1b   : > { %s1935_s8 = sshll.u32 %s209_s7, 3  ;;  %s2327_s10 = sshll.u32 %s1940_s9, 7 }
  0x1c   : > { %2364 = sst [smem:[#allocation22_spill]] %s2363_s4  ;;  %s2365_s1 = sld [smem:[#allocation31_spill]] }
  0x1d   : > { %s211_s28 = scalar_lea.vmem [#allocation8], %s1935_s8  ;;  %p1957_p8 = pnand %p2328_p7, %p1921_p5 }
  0x1e   : > { %s221_s7 = sshll.u32 %s211_s28, 4  ;;  %s1964_s11 = scalar_lea.sflag [#allocation9], %s207_s6  ;;  %s1951_s7 = int_to_ptr.vmem [resolvable:$true] %s221_s7 }
  0x1f   : > { %s2366_s5 = scalar_select %p1957_p8, 1, 0 }
  0x20   : > { %2368 = sst [smem:[#allocation24_spill]] %s1964_s11  ;;  %p2349_p11 = pneg %p1957_p8 }
  0x21   : > { %2367 = sst [smem:[#allocation23_spill]] %s2366_s5 }
  0x22   : > { %s1948_s29 = scalar_lea.hbm %s2365_s1, %s2327_s10  ;;  %s1572_s10 = scalar_lea.hbm %s2365_s1, 1024 }
  0x23   : > { %s1567_s12 = scalar_lea.hbm %s1948_s29, 128  ;;  %p1573_p3 = scmp.lt.u32.totalorder %s1948_s29, %s2365_s1 }
  0x24   : > { %p1568_p10 = scmp.ne.s32.totalorder %s1948_s29, %s1567_s12  ;;  %p1574_p4 = scmp.lt.u32.totalorder %s1572_s10, %s1567_s12 }
  0x25   : > { %p1576_p7 = scmp.lt.u32.totalorder %s1567_s12, %s1948_s29 }
  0x26   : > { %p1570_p12 = pnand %p2349_p11, %p1568_p10  ;;  %p1575_p5 = por %p1574_p4, %p1573_p3 }
  0x28   : > { %p1571_p13 = pneg %p1570_p12  ;;  %p1577_p2 = por %p1576_p7, %p1575_p5 }
  0x2a   : > { %p1578_p1 = pnand %p1577_p2, %p1571_p13 }
  0x2c   : > { %1581 = shalt.err (!%p1578_p1)
}
  0x2d   : > { %s1582_s6 = scalar_lea.vmem %s1951_s7, 128  ;;  %s1801_s28 = smov [#allocation8]  }
  0x2e   : > { %p1583_p10 = scmp.ne.s32.totalorder %s1951_s7, %s1582_s6  ;;  %s1587_s30 = sshll.u32 %s1801_s28, 4  ;;  %s1588_s30 = int_to_ptr.vmem [resolvable:$false] %s1587_s30 }
  0x2f   : > { %s1589_s19 = scalar_lea.vmem %s1588_s30, 256  ;;  %p1590_p6 = scmp.lt.s32.totalorder %s1951_s7, %s1588_s30 }
  0x30   : > { %p1585_p12 = pnand %p1583_p10, %p2349_p11  ;;  %p1591_p3 = scmp.lt.s32.totalorder %s1589_s19, %s1582_s6 }
  0x32   : > { %p1586_p9 = pneg %p1585_p12  ;;  %p1592_p4 = por %p1591_p3, %p1590_p6 }
  0x34   : > { %p1593_p7 = pnand %p1592_p4, %p1586_p9 }
  0x36   : > { %1596 = shalt.err (!%p1593_p7)
}
  0x37   : > { %1413 = dma.hbm_to_vmem [thread:$0]  (!%p1957_p8), %s1948_s29, 128, %s1951_s7, %s1964_s11  }
  0x38   : > { %p247_p1 = scmp.lt.s32.totalorder %s1799_s24, 33  ;;  %p2369_p2 = scmp.ge.s32.totalorder %s1799_s24, 1 }
  0x39   : > { %s1307_s10 = sadd.s32 4294967294, %s1799_s24   ;;  %s40_s12 = sadd.s32 1, %s1791_s22 }
  0x3a   : > { %p1995_p6 = pnand %p2369_p2, %p247_p1  ;;  %s2432_s12 = smov (!%p1904_p0, %s40_s12), %s1791_s22 }
  0x3b   : > { %s59_s6 = sadd.s32 1, %s1771_s17  ;;  %p66_p9 = scmp.ne.s32.totalorder %s1771_s17, %s1767_s16 }
  0x3c   : > { %s2370_s20 = scalar_select %p1995_p6, 1, 0 }
  0x3d   : > { %p42_p13 = scmp.ge.s32.totalorder %s2432_s12, 4  ;;  %p72_p5 = scmp.ne.s32.totalorder %s1767_s16, %s1763_s15 }
  0x3e   : > { %2371 = sst [smem:[#allocation25_spill]] %s2370_s20  ;;  %p2372_p10 = scmp.eq.s32.totalorder %s1799_s24, 0 }
  0x3f   : > { %p160_p3 = scmp.eq.s32.totalorder %s1901_s25, 31  ;;  %s2434_s12 = smov (%p42_p13, %s2432_s12), 0 }
  0x40   : > { %p2011_p12 = por %p2372_p10, %p66_p9  ;;  %2374 = sst [smem:[#allocation26_spill]] %s2434_s12 }
  0x41   : > { %s2375_s7 = sadd.s32 1, %s1795_s23  ;;  %s53_s27 = ssub.s32 %s1791_s22, %s2434_s12 }
  0x42   : > { %s2436_s7 = smov (!%p42_p13, %s2375_s7), %s1795_s23  ;;  %p2376_p0 = scmp.eq.s32.totalorder %s1901_s25, 0 }
  0x43   : > { %p50_p7 = scmp.ge.s32.totalorder %s2436_s7, 2  ;;  %p2029_p1 = por %p160_p3, %p66_p9 }
  0x44   : > { %p2025_p4 = por %p2376_p0, %p72_p5  ;;  %p166_p2 = scmp.eq.s32.totalorder %s1307_s10, 31 }
  0x45   : > { %s2379_s30 = scalar_select %p2029_p1, 1, 0 }
  0x46   : > { %s2377_s28 = scalar_select %p2025_p4, 1, 0 }
  0x47   : > { %2380 = sst [smem:[#allocation28_spill]] %s2379_s30  ;;  %s186_s19 = sand.u32 1, %s1771_s17  }
  0x48   : > { %2378 = sst [smem:[#allocation27_spill]] %s2377_s28  ;;  %s2438_s7 = smov (%p50_p7, %s2436_s7), 0 }
  0x49   : > { %2381 = sst [smem:[#allocation29_spill]] %s2438_s7  ;;  %p2036_p13 = por %p166_p2, %p72_p5 }
  0x4a   : > { %s52_s1 = ssub.s32 %s1795_s23, %s2438_s7  ;;  %s1310_s12 = sshll.u32 %s186_s19, 3 }
  0x4b   : > { %s2382_s3 = scalar_select %p2036_p13, 1, 0 }
  0x4c   : > { %s54_s15 = sor.u32 %s53_s27, %s52_s1  ;;  %s2384_s18 = ssub.s32 %s1787_s21, %s2430_s26 }
  0x4d   : > { %2383 = sst [smem:[#allocation30_spill]] %s2382_s3  ;;  %s84_s4 = sor.u32 %s2384_s18, %s52_s1 }
  0x4e   : > { %p57_p9 = scmp.eq.s32.totalorder %s54_s15, 0  ;;  %p87_p10 = scmp.eq.s32.totalorder %s84_s4, 0 }
  0x4f   : > { %s2385_s10 = sshll.u32 %s1795_s23, 2  ;;  %s2386_s25 = sadd.s32 1, %s1759_s14 }
  0x50   : > { %s196_s30 = sadd.s32 %s1791_s22, %s2385_s10  ;;  %s190_s20 = scalar_lea.vmem [#allocation5], %s1310_s12 }
  0x51   : > { %s2049_s13 = scalar_select %p57_p9, %s1771_s17, %s59_s6  }
  0x52   : > { %s2054_s28 = scalar_select %p87_p10, %s1759_s14, %s2386_s25  }
  0x53   : > { %s1312_s16 = sshll.u32 %s196_s30, 7  ;;  %s200_s11 = sshll.u32 %s190_s20, 4  ;;  %s2061_s11 = int_to_ptr.vmem [resolvable:$true] %s200_s11 }
  0x54   : > { %s2059_s7 = scalar_lea.hbm %s2321_s0, %s1312_s16  ;;  %p2387_p5 = scmp.lt.s32.totalorder %s1799_s24, 32 }
  0x55   : > { %s232_s15 = scalar_lea.vmem [#allocation10], %s1935_s8  ;;  %s2389_s25 = sshll.u32 %s1940_s9, 7 }
  0x56   : > { %p2067_p3 = pnand %p2387_p5, %p2011_p12  ;;  %s242_s18 = sshll.u32 %s232_s15, 4  ;;  %s2079_s18 = int_to_ptr.vmem [resolvable:$true] %s242_s18 }
  0x57   : > { %s2077_s4 = scalar_lea.hbm %s2323_s2, %s2389_s25  ;;  %s187_s5 = scalar_lea.sflag [#allocation6], %s186_s19 }
  0x58   : > { %s1597_s20 = scalar_lea.hbm %s2059_s7, 128  ;;  %p1599_p12 = pneg %p2067_p3 }
  0x59   : > { %p1598_p0 = scmp.ne.s32.totalorder %s2059_s7, %s1597_s20  ;;  %s1602_s9 = scalar_lea.hbm %s2321_s0, 1024 }
  0x5a   : > { %p1603_p9 = scmp.lt.u32.totalorder %s2059_s7, %s2321_s0  ;;  %p1604_p10 = scmp.lt.u32.totalorder %s1602_s9, %s1597_s20 }
  0x5b   : > { %p1600_p7 = pnand %p1599_p12, %p1598_p0  ;;  %p1606_p11 = scmp.lt.u32.totalorder %s1597_s20, %s2059_s7 }
  0x5c   : > { %p1605_p5 = por %p1604_p10, %p1603_p9 }
  0x5d   : > { %p1601_p2 = pneg %p1600_p7 }
  0x5e   : > { %p1607_p13 = por %p1606_p11, %p1605_p5 }
  0x60   : > { %p1608_p1 = pnand %p1607_p13, %p1601_p2 }
  0x62   : > { %1611 = shalt.err (!%p1608_p1)
}
  0x63   : > { %s1612_s27 = scalar_lea.vmem %s2061_s11, 128  ;;  %s1802_s30 = smov [#allocation5]  }
  0x64   : > { %p1613_p0 = scmp.ne.s32.totalorder %s2061_s11, %s1612_s27  ;;  %s1617_s19 = sshll.u32 %s1802_s30, 4  ;;  %s1618_s19 = int_to_ptr.vmem [resolvable:$false] %s1617_s19 }
  0x65   : > { %s1619_s10 = scalar_lea.vmem %s1618_s19, 256  ;;  %p1620_p6 = scmp.lt.s32.totalorder %s2061_s11, %s1618_s19 }
  0x66   : > { %p1615_p7 = pnand %p1613_p0, %p1599_p12  ;;  %p1621_p9 = scmp.lt.s32.totalorder %s1619_s10, %s1612_s27 }
  0x68   : > { %p1616_p4 = pneg %p1615_p7  ;;  %p1622_p10 = por %p1621_p9, %p1620_p6 }
  0x6a   : > { %p1623_p11 = pnand %p1622_p10, %p1616_p4 }
  0x6c   : > { %1626 = shalt.err (!%p1623_p11)
}
  0x6d   : > { %1410 = dma.hbm_to_vmem [thread:$0]  (!%p2067_p3), %s2059_s7, 128, %s2061_s11, %s187_s5  }
  0x6e   : > { %s1627_s25 = scalar_lea.hbm %s2077_s4, 128  ;;  %p2391_p13 = pneg %p1957_p8 }
  0x6f   : > { %p1628_p1 = scmp.ne.s32.totalorder %s2077_s4, %s1627_s25  ;;  %s1632_s20 = scalar_lea.hbm %s2323_s2, 1024 }
  0x70   : > { %p1633_p6 = scmp.lt.u32.totalorder %s2077_s4, %s2323_s2  ;;  %p1634_p4 = scmp.lt.u32.totalorder %s1632_s20, %s1627_s25 }
  0x71   : > { %p1630_p12 = pnand %p1628_p1, %p2391_p13  ;;  %p1636_p0 = scmp.lt.u32.totalorder %s1627_s25, %s2077_s4 }
  0x72   : > { %p1635_p5 = por %p1634_p4, %p1633_p6 }
  0x73   : > { %p1631_p2 = pneg %p1630_p12 }
  0x74   : > { %p1637_p7 = por %p1636_p0, %p1635_p5 }
  0x76   : > { %p1638_p9 = pnand %p1637_p7, %p1631_p2 }
  0x78   : > { %1641 = shalt.err (!%p1638_p9)
}
  0x79   : > { %s1642_s11 = scalar_lea.vmem %s2079_s18, 128  ;;  %p2392_p10 = pmov %p2391_p13 }
  0x7a   : > { %p1643_p3 = scmp.ne.s32.totalorder %s2079_s18, %s1642_s11  ;;  %s1803_s7 = smov [#allocation10]  }
  0x7b   : > { %s1647_s5 = sshll.u32 %s1803_s7, 4  ;;  %s1648_s5 = int_to_ptr.vmem [resolvable:$false] %s1647_s5 }
  0x7c   : > { %p1645_p11 = pnand %p1643_p3, %p2392_p10  ;;  %s1649_s8 = scalar_lea.vmem %s1648_s5, 256 }
  0x7d   : > { %p1650_p13 = scmp.lt.s32.totalorder %s2079_s18, %s1648_s5  ;;  %p1651_p12 = scmp.lt.s32.totalorder %s1649_s8, %s1642_s11 }
  0x7e   : > { %p1646_p1 = pneg %p1645_p11 }
  0x7f   : > { %p1652_p6 = por %p1651_p12, %p1650_p13 }
  0x81   : > { %p1653_p4 = pnand %p1652_p6, %p1646_p1 }
  0x83   : > { %1656 = shalt.err (!%p1653_p4)
}
  0x84   : > { %s2393_s9 = sld [smem:[#allocation24_spill]]  ;;  %s2394_s6 = sld [smem:[#allocation25_spill]] }
  0x8a   : > { %1416 = dma.hbm_to_vmem [thread:$0]  (!%p1957_p8), %s2077_s4, 128, %s2079_s18, %s2393_s9  }
  0x8b   : > { %p2395_p2 = scmp.ne.s32.totalorder %s2394_s6, 0 }
  0x8c   : > { %s2396_s29 = sld [smem:[#allocation17_spill]] (!%p2395_p2)  ;;  %s2397_s27 = sld [smem:[#allocation27_spill]] (!%p2395_p2) }
  0x8d   : > { %251 = sbr.rel (%p2395_p2) target bundleno = 1634 (0x662), region = 32 }
  0x92   : > { %s2133_s30 = sand.u32 (!%p2395_p2), 1, %s2396_s29   ;;  %p2398_p5 = scmp.ne.s32.totalorder (!%p2395_p2), %s2397_s27, 0 }
  0x93   : > { %s1320_s19 = sshll.u32 (!%p2395_p2), %s2133_s30, 3  ;;  %s254_s10 = scalar_lea.sflag (!%p2395_p2), [#allocation6], %s2133_s30 }
  0x94   : > { %s2137_s25 = scalar_lea.vmem [#allocation5], %s1320_s19 }
  0x95   : > { %1738 = dma.done.wait (%p2398_p5), %s254_s10, 128  }
  0x96   : > { %1740 = vsyncadd (%p2398_p5), %s254_s10, 4294967168  ;;  %s2399_s15 = sld [smem:[#allocation21_spill]]  ;;  %s2401_s4 = sld [smem:[#allocation22_spill]] }
  0x97   : > { %s2400_s18 = sld [smem:[#allocation15_spill]] }
  0x9c   : > { %s262_s3 = sand.u32 1, %s2399_s15   ;;  %p2402_p8 = scmp.ne.s32.totalorder %s2401_s4, 0 }
  0x9d   : > { %s264_s16 = sand.u32 1, %s2400_s18   ;;  %s263_s12 = scalar_lea.sflag [#allocation9], %s262_s3 }
  0x9e   : > { %s2145_s20 = sshll.u32 %s264_s16, 3 }
  0x9f   : > { %s266_s1 = scalar_lea.vmem [#allocation8], %s2145_s20 }
  0xa0   : > { %1742 = dma.done.wait (%p2402_p8), %s263_s12, 256  }
  0xa1   : > { %1744 = vsyncadd (%p2402_p8), %s263_s12, 4294967040  ;;  %s275_s11 = scalar_lea.vmem [#allocation10], %s2145_s20  ;;  %s2153_s7 = scalar_lea.vmem [#allocation11], %s1320_s19 }
  0xa2   : > { %s2403_s5 = sld [smem:[#allocation18_spill]] }
  0xa8   : > { %p1324_p0 = scmp.ne.s32.totalorder %s2403_s5, 0 }
  0xa9   : > { %vm312_vm0 = vcmask (!%p1324_p0), 7168   ;;  %vm321_vm1 = vcmask (!%p1324_p0), 64512   ;;  %v1804_v0 = vmov (!%p1324_p0), -inf   ;;  %v1805_v1 = vmov (!%p1324_p0), 0.0  }
  0xaa   : > { %311 = sbr.rel (%p1324_p0) target bundleno = 177 (0xb1), region = 48  ;;  %313 = vst.msk [vmem:[#allocation2] sm:$0xff] (!%p1324_p0), %vm312_vm0, %v1804_v0  ;;  %314 = vst.msk [vmem:[#allocation2 + $0x8] sm:$0xff] (!%p1324_p0), %vm312_vm0, %v1804_v0 }
  0xab   : > { %315 = vst.msk [vmem:[#allocation2 + $0x10] sm:$0xff] (!%p1324_p0), %vm312_vm0, %v1804_v0  ;;  %316 = vst.msk [vmem:[#allocation2 + $0x18] sm:$0xff] (!%p1324_p0), %vm312_vm0, %v1804_v0 }
  0xac   : > { %317 = vst.msk [vmem:[#allocation3] sm:$0xff] (!%p1324_p0), %vm312_vm0, %v1805_v1  ;;  %318 = vst.msk [vmem:[#allocation3 + $0x8] sm:$0xff] (!%p1324_p0), %vm312_vm0, %v1805_v1 }
  0xad   : > { %319 = vst.msk [vmem:[#allocation3 + $0x10] sm:$0xff] (!%p1324_p0), %vm312_vm0, %v1805_v1  ;;  %320 = vst.msk [vmem:[#allocation3 + $0x18] sm:$0xff] (!%p1324_p0), %vm312_vm0, %v1805_v1 }
  0xae   : > { %322 = vst.msk [vmem:[#allocation4] sm:$0xff] (!%p1324_p0), %vm321_vm1, %v1805_v1  ;;  %323 = vst.msk [vmem:[#allocation4 + $0x8] sm:$0xff] (!%p1324_p0), %vm321_vm1, %v1805_v1 }
  0xaf   : > { %324 = vst.msk [vmem:[#allocation4 + $0x10] sm:$0xff] (!%p1324_p0), %vm321_vm1, %v1805_v1  ;;  %325 = vst.msk [vmem:[#allocation4 + $0x18] sm:$0xff] (!%p1324_p0), %vm321_vm1, %v1805_v1 }
  0xb1 PF: > { %v328_v2 = vld [vmem:[%s266_s1] sm:$0xff]  ;;  %vm330_vm2 = vcmask 64512   ;;  %v326_v3 = vld [vmem:[%s2137_s25] sm:$0xff]  ;;  %v1806_v4 = vmov 0.0   ;;  %vm1807_vm3 = vmmov 0   ;;  %v1808_v9 = vmov 0  }
  0xb2   : > { %1359 = vmatprep.subr.mxu0 %v1806_v4  ;;  %1361 = vmatprep.mubr.msk.f32.mxu0 %vm1807_vm3, %v1806_v4  ;;  %v327_v5 = vmul.f32 0.35355338, %v326_v3  ;;  %s1809_s8 = smov 120   ;;  %s1810_s9 = smov 112   ;;  %v407_v10 = vld [vmem:[#allocation2] sm:$0xff]  ;;  %vm429_vm4 = vcmask 7168  }
  0xb3   : > { %1360 = vmatpush3.xpose.msk.msra.mxu0 %vm330_vm2, %v328_v2  ;;  %1364 = vmatprep.subr.mxu1 %v1806_v4  ;;  %s1811_s6 = smov 104   ;;  %v2178_v14 = vld [vmem:[%s275_s11] sm:$0xff]  ;;  %v784_v40 = vld [vmem:[#allocation2 + $0x10] sm:$0xff]  ;;  %v2203_v43 = vld [vmem:[#allocation2 + $0x18] sm:$0xff]  ;;  %s2404_s29 = sld [smem:[#allocation18_spill]] }
  0xb4   : > { %1366 = vmatprep.mubr.msk.f32.mxu1 %vm1807_vm3, %v1806_v4  ;;  %1374 = vmatprep.subr.mxu0 %v1806_v4  ;;  %v593_v37 = vld [vmem:[#allocation2 + $0x8] sm:$0xff] }
  0xb5   : > { %1539 = vset.pattern.permute.xlu0 %v1808_v9  ;;  %1540 = vset.pattern.permute.xlu1 %v1808_v9  ;;  %v431_v60 = vld [vmem:[#allocation4] sm:$0xff] }
  0xb6   : > { %1362 = vmatmul.mubr.msk.f32.vlgmr.msra.gmra.mrb[0].mxu0 %vm330_vm2, %v327_v5  ;;  %516 = vrot.lane.b32.xlu1 %v328_v2, %s1809_s8 }
  0xb7   : > { %1376 = vmatprep.mubr.msk.f32.mxu0 %vm1807_vm3, %v1806_v4  ;;  %1365 = vmatpush3.msra.mxu1 %v2178_v14 }
  0xb8   : > { %1369 = vmatprep.subr.mxu1 %v1806_v4 }
  0xb9   : > { %p1337_p7 = scmp.ne.s32.totalorder %s2404_s29, 3 }
  0xba   : > { %514 = vrot.lane.b32.xlu1 %v327_v5, %s1809_s8  ;;  %s1813_s27 = smov (!%p1337_p7), 8   ;;  %s1814_s19 = smov (!%p1337_p7), 16   ;;  %vm1112_vm5 = vcmask (!%p1337_p7), 130112   ;;  %vm1127_vm6 = vcmask (!%p1337_p7), 195712   ;;  %vm1142_vm7 = vcmask (!%p1337_p7), 261312  }
  0xbb   : > { %s1815_s10 = smov (!%p1337_p7), 24  }
  0xbe   : > { %707 = vrot.lane.b32.xlu1 %v328_v2, %s1810_s9 }
  0xc2   : > { %705 = vrot.lane.b32.xlu1 %v327_v5, %s1810_s9 }
  0xc6   : > { %897 = vrot.lane.b32.xlu1 %v328_v2, %s1811_s6 }
  0xca   : > { %895 = vrot.lane.b32.xlu1 %v327_v5, %s1811_s6 }
 0x128   : > { %v517_v15 = vpop.permute.xlu1 %516 }
 0x12c   : > { %v515_v18 = vpop.permute.xlu1 %514 }
 0x130   : > { %v708_v20 = vpop.permute.xlu1 %707 }
 0x134   : > { %v706_v21 = vpop.permute.xlu1 %705 }
 0x138   : > { %v898_v23 = vpop.permute.xlu1 %897 }
 0x13c   : > { %v896_v24 = vpop.permute.xlu1 %895 }
 0x189   : > { %v403_v6 = vpop.f32.mrb[0].mxu0 }
 0x18a   : > { %v1363_v7 = vpop.f32.mrb[1].mxu0  ;;  %v408_v8 = vsel %vm330_vm2, %v403_v6, -inf }
 0x18b   : > { %409 = vmax.xlane.f32.xlu0 %v408_v8 }
 0x218   : > { %v410_v11 = vpop.xlane.xlu0 %409 }
 0x219   : > { %v411_v12 = vmax.f32 %v407_v10, %v410_v11 }
 0x21b   : > { %v412_v13 = vsub.f32 %v407_v10, %v411_v12  ;;  %513 = vst.msk [vmem:[#allocation2] sm:$0xff] %vm429_vm4, %v411_v12  ;;  %417 = vperm.xlu0 %1539, %v411_v12  }
 0x21d   : > { %v413_v36 = vmul.f32 1.442695, %v412_v13 }
 0x29a   : > { %v418_v16 = vpop.permute.xlu0 %417 }
 0x29b   : > { %v420_v17 = vsub.f32 %v403_v6, %v418_v16  ;;  %v423_v16 = vld [vmem:[#allocation3] sm:$0xff] }
 0x29d   : > { %v421_v19 = vmul.f32 1.442695, %v420_v17 }
 0x29f   : > { %1541 = vpow2.f32 %v421_v19 }
 0x2a0   : > { %1543 = vpow2.f32 %v413_v36 }
 0x2a9   : > { %v1542_v22 = vpop.eup %1541 }
 0x2aa   : > { %1367 = vmatmul.mubr.msk.f32.vlgmr.msra.gmra.mrb[0].mxu1 %vm330_vm2, %v1542_v22  ;;  %v1544_v48 = vpop.eup %1543  ;;  %v425_v52 = vsel %vm330_vm2, %v1542_v22, 0.0 }
 0x2ab   : > { %1370 = vmatpush3.xpose.msk.msra.mxu1 %vm330_vm2, %v517_v15  ;;  %1371 = vmatprep.mubr.msk.f32.mxu1 %vm1807_vm3, %v1806_v4  ;;  %v424_v17 = vmul.f32 %v1544_v48, %v423_v16 }
 0x2ac   : > { %1379 = vmatprep.subr.mxu1 %v1806_v4 }
 0x2ae   : > { %1372 = vmatmul.mubr.msk.f32.vlgmr.msra.gmra.mrb[2].mxu1 %vm330_vm2, %v515_v18 }
 0x2af   : > { %1380 = vmatpush3.xpose.msk.msra.mxu1 %vm330_vm2, %v708_v20  ;;  %1381 = vmatprep.mubr.msk.f32.mxu1 %vm1807_vm3, %v1806_v4 }
 0x2b0   : > { %1389 = vmatprep.subr.mxu1 %v1806_v4 }
 0x2b2   : > { %1382 = vmatmul.mubr.msk.f32.vlgmr.msra.gmra.mrb[4].mxu1 %vm330_vm2, %v706_v21  ;;  %v610_v21 = vld [vmem:[#allocation3 + $0x8] sm:$0xff] }
 0x2b3   : > { %1390 = vmatpush3.xpose.msk.msra.mxu1 %vm330_vm2, %v898_v23  ;;  %1391 = vmatprep.mubr.msk.f32.mxu1 %vm1807_vm3, %v1806_v4  ;;  %v801_v23 = vld [vmem:[#allocation3 + $0x10] sm:$0xff] }
 0x2b6   : > { %1392 = vmatmul.mubr.msk.f32.vlgmr.msra.gmra.mrb[6].mxu1 %vm330_vm2, %v896_v24 }
 0x37d   : > { %v2197_v25 = vpop.f32.mrb[0].mxu1 }
 0x37e   : > { %v1368_v26 = vpop.f32.mrb[1].mxu1 }
 0x381   : > { %v588_v27 = vpop.f32.mrb[2].mxu1 }
 0x382   : > { %v1373_v28 = vpop.f32.mrb[3].mxu1  ;;  %v594_v29 = vsel %vm330_vm2, %v588_v27, -inf }
 0x383   : > { %595 = vmax.xlane.f32.xlu1 %v594_v29  ;;  %v991_v28 = vld [vmem:[#allocation3 + $0x18] sm:$0xff] }
 0x385   : > { %v779_v30 = vpop.f32.mrb[4].mxu1 }
 0x386   : > { %v1383_v31 = vpop.f32.mrb[5].mxu1  ;;  %v785_v32 = vsel %vm330_vm2, %v779_v30, -inf }
 0x387   : > { %786 = vmax.xlane.f32.xlu0 %v785_v32 }
 0x389   : > { %v969_v33 = vpop.f32.mrb[6].mxu1 }
 0x38a   : > { %v1393_v34 = vpop.f32.mrb[7].mxu1  ;;  %v975_v35 = vsel %vm330_vm2, %v969_v33, -inf }
 0x38b   : > { %976 = vmax.xlane.f32.xlu1 %v975_v35  ;;  %v809_v35 = vld [vmem:[#allocation4 + $0x10] sm:$0xff] }
 0x410   : > { %v596_v38 = vpop.xlane.xlu1 %595 }
 0x411   : > { %v597_v39 = vmax.f32 %v593_v37, %v596_v38 }
 0x413   : > { %704 = vst.msk [vmem:[#allocation2 + $0x8] sm:$0xff] %vm429_vm4, %v597_v39  ;;  %603 = vperm.xlu1 %1540, %v597_v39   ;;  %v598_v51 = vsub.f32 %v593_v37, %v597_v39 }
 0x414   : > { %v787_v41 = vpop.xlane.xlu0 %786 }
 0x415   : > { %v788_v42 = vmax.f32 %v784_v40, %v787_v41  ;;  %v599_v53 = vmul.f32 1.442695, %v598_v51 }
 0x417   : > { %v789_v44 = vsub.f32 %v784_v40, %v788_v42  ;;  %894 = vst.msk [vmem:[#allocation2 + $0x10] sm:$0xff] %vm429_vm4, %v788_v42  ;;  %794 = vperm.xlu0 %1539, %v788_v42   ;;  %v999_v40 = vld [vmem:[#allocation4 + $0x18] sm:$0xff] }
 0x418   : > { %v977_v45 = vpop.xlane.xlu1 %976 }
 0x419   : > { %v790_v46 = vmul.f32 1.442695, %v789_v44  ;;  %v978_v47 = vmax.f32 %v2203_v43, %v977_v45 }
 0x41b   : > { %1545 = vpow2.f32 %v790_v46  ;;  %v979_v49 = vsub.f32 %v2203_v43, %v978_v47  ;;  %1084 = vst.msk [vmem:[#allocation2 + $0x18] sm:$0xff] %vm429_vm4, %v978_v47  ;;  %984 = vperm.xlu1 %1540, %v978_v47   ;;  %434 = vperm.xlu0 %1539, %v1544_v48  }
 0x41c   : > { %1547 = vpow2.f32 %v599_v53 }
 0x41f   : > { %626 = vrot.lane.b32.xlu1 %v2178_v14, %s1809_s8 }
 0x423   : > { %816 = vrot.lane.b32.xlu1 %v2178_v14, %s1810_s9 }
 0x425   : > { %v2213_v50 = vpop.eup %1545 }
 0x426   : > { %812 = vperm.xlu0 %1539, %v2213_v50   ;;  %v1548_v54 = vpop.eup %1547 }
 0x427   : > { %1006 = vrot.lane.b32.xlu1 %v2178_v14, %s1811_s6  ;;  %v980_v14 = vmul.f32 1.442695, %v979_v49  ;;  %v611_v22 = vmul.f32 %v1548_v54, %v610_v21 }
 0x44b   : > { %426 = vadd.xlane.f32.xlu1 %v425_v52  ;;  %v1812_v52 = vmov (!%p1337_p7), 0  }
 0x45c   : > { %621 = vperm.xlu1 %1540, %v1548_v54  }
 0x460   : > { %1558 = vset.pattern.permute.xlu1 (!%p1337_p7), %v1812_v52 }
 0x492   : > { %v604_v55 = vpop.permute.xlu1 %603 }
 0x493   : > { %v606_v56 = vsub.f32 %v588_v27, %v604_v55 }
 0x495   : > { %v607_v57 = vmul.f32 1.442695, %v606_v56 }
 0x496   : > { %v795_v58 = vpop.permute.xlu0 %794 }
 0x497   : > { %1549 = vpow2.f32 %v607_v57  ;;  %v797_v59 = vsub.f32 %v779_v30, %v795_v58 }
 0x499   : > { %v798_v61 = vmul.f32 1.442695, %v797_v59 }
 0x49a   : > { %v985_v62 = vpop.permute.xlu1 %984  ;;  %v435_v63 = vpop.permute.xlu0 %434 }
 0x49b   : > { %1551 = vpow2.f32 %v798_v61  ;;  %v987_v0 = vsub.f32 %v969_v33, %v985_v62  ;;  %v437_v1 = vmul.f32 %v435_v63, %v431_v60  ;;  %v618_v33 = vld [vmem:[#allocation4 + $0x8] sm:$0xff] }
 0x49d   : > { %v988_v2 = vmul.f32 1.442695, %v987_v0  ;;  %v511_v3 = vadd.f32 %v2197_v25, %v437_v1  ;;  %v802_v25 = vmul.f32 %v2213_v50, %v801_v23 }
 0x49e   : > { %v627_v5 = vpop.permute.xlu1 %626 }
 0x49f   : > { %1553 = vpow2.f32 %v988_v2  ;;  %512 = vst.msk [vmem:[#allocation4] sm:$0xff] %vm330_vm2, %v511_v3  ;;  %1375 = vmatpush3.msra.mxu0 %v627_v5 }
 0x4a0   : > { %1384 = vmatprep.subr.mxu0 %v1806_v4  ;;  %1555 = vpow2.f32 %v980_v14 }
 0x4a1   : > { %v1550_v6 = vpop.eup %1549 }
 0x4a2   : > { %1377 = vmatmul.mubr.msk.f32.vlgmr.msra.gmra.mrb[2].mxu0 %vm330_vm2, %v1550_v6  ;;  %v817_v7 = vpop.permute.xlu1 %816  ;;  %v612_v8 = vsel %vm330_vm2, %v1550_v6, 0.0 }
 0x4a3   : > { %1385 = vmatpush3.msra.mxu0 %v817_v7  ;;  %613 = vadd.xlane.f32.xlu0 %v612_v8 }
 0x4a4   : > { %1386 = vmatprep.mubr.msk.f32.mxu0 %vm1807_vm3, %v1806_v4  ;;  %1394 = vmatprep.subr.mxu0 %v1806_v4 }
 0x4a5   : > { %v1552_v9 = vpop.eup %1551  ;;  %v813_v20 = vpop.permute.xlu0 %812 }
 0x4a6   : > { %1387 = vmatmul.mubr.msk.f32.vlgmr.msra.gmra.mrb[4].mxu0 %vm330_vm2, %v1552_v9  ;;  %v1007_v10 = vpop.permute.xlu1 %1006  ;;  %v803_v11 = vsel %vm330_vm2, %v1552_v9, 0.0  ;;  %v815_v39 = vmul.f32 %v813_v20, %v809_v35  ;;  %v1091_v1 = vld [vmem:[#allocation4] sm:$0xff] (!%p1337_p7) }
 0x4a7   : > { %1395 = vmatpush3.msra.mxu0 %v1007_v10  ;;  %804 = vadd.xlane.f32.xlu0 %v803_v11 }
 0x4a8   : > { %1396 = vmatprep.mubr.msk.f32.mxu0 %vm1807_vm3, %v1806_v4 }
 0x4a9   : > { %v1554_v12 = vpop.eup %1553 }
 0x4aa   : > { %1397 = vmatmul.mubr.msk.f32.vlgmr.msra.gmra.mrb[6].mxu0 %vm330_vm2, %v1554_v12  ;;  %v993_v13 = vsel %vm330_vm2, %v1554_v12, 0.0  ;;  %v1556_v15 = vpop.eup %1555 }
 0x4ab   : > { %994 = vadd.xlane.f32.xlu1 %v993_v13  ;;  %v992_v30 = vmul.f32 %v1556_v15, %v991_v28 }
 0x4bd   : > { %1002 = vperm.xlu0 %1539, %v1556_v15  }
 0x4c1   : > { %1557 = vset.pattern.permute.xlu0 (!%p1337_p7), %v1812_v52 }
 0x4d8   : > { %v427_v18 = vpop.xlane.xlu1 %426 }
 0x4d9   : > { %v428_v19 = vadd.f32 %v427_v18, %v424_v17 }
 0x4db   : > { %430 = vst.msk [vmem:[#allocation3] sm:$0xff] %vm429_vm4, %v428_v19 }
 0x4dc   : > { %v622_v26 = vpop.permute.xlu1 %621 }
 0x4dd   : > { %v624_v34 = vmul.f32 %v622_v26, %v618_v33 }
 0x4e2   : > { %v1089_v53 = vld [vmem:[#allocation3] sm:$0xff] (!%p1337_p7) }
 0x530   : > { %v614_v4 = vpop.xlane.xlu0 %613 }
 0x531   : > { %v615_v24 = vadd.f32 %v614_v4, %v611_v22 }
 0x533   : > { %616 = vst.msk [vmem:[#allocation3 + $0x8] sm:$0xff] %vm429_vm4, %v615_v24 }
 0x534   : > { %v805_v27 = vpop.xlane.xlu0 %804 }
 0x535   : > { %v806_v29 = vadd.f32 %v805_v27, %v802_v25 }
 0x537   : > { %807 = vst.msk [vmem:[#allocation3 + $0x10] sm:$0xff] %vm429_vm4, %v806_v29 }
 0x538   : > { %v995_v31 = vpop.xlane.xlu1 %994 }
 0x539   : > { %v996_v32 = vadd.f32 %v995_v31, %v992_v30 }
 0x53a   : > { %v1099_v49 = vld [vmem:[#allocation3 + $0x8] sm:$0xff] (!%p1337_p7) }
 0x53b   : > { %997 = vst.msk [vmem:[#allocation3 + $0x18] sm:$0xff] %vm429_vm4, %v996_v32  ;;  %1559 = vrcp.f32 (!%p1337_p7), %v1099_v49 }
 0x53c   : > { %v1003_v41 = vpop.permute.xlu0 %1002 }
 0x53d   : > { %v1005_v45 = vmul.f32 %v1003_v41, %v999_v40 }
 0x53e   : > { %v1114_v51 = vld [vmem:[#allocation3 + $0x10] sm:$0xff] (!%p1337_p7) }
 0x542   : > { %v1129_v50 = vld [vmem:[#allocation3 + $0x18] sm:$0xff] (!%p1337_p7) }
 0x543   : > { %1561 = vrcp.f32 (!%p1337_p7), %v1129_v50 }
 0x544   : > { %1563 = vrcp.f32 (!%p1337_p7), %v1114_v51 }
 0x545   : > { %1565 = vrcp.f32 (!%p1337_p7), %v1089_v53  ;;  %v1560_v54 = vpop.eup (!%p1337_p7), %1559 }
 0x546   : > { %1104 = vperm.xlu0 (!%p1337_p7), %1557, %v1560_v54  }
 0x54d   : > { %v1562_v55 = vpop.eup (!%p1337_p7), %1561 }
 0x54e   : > { %v1564_v56 = vpop.eup (!%p1337_p7), %1563  ;;  %1134 = vperm.xlu1 (!%p1337_p7), %1558, %v1562_v55  }
 0x54f   : > { %v1566_v57 = vpop.eup (!%p1337_p7), %1565  ;;  %1119 = vperm.xlu0 (!%p1337_p7), %1557, %v1564_v56  }
 0x552   : > { %1094 = vperm.xlu1 (!%p1337_p7), %1558, %v1566_v57  }
 0x575   : > { %v698_v36 = vpop.f32.mrb[2].mxu0 }
 0x576   : > { %v702_v37 = vadd.f32 %v698_v36, %v624_v34  ;;  %v1378_v38 = vpop.f32.mrb[3].mxu0 }
 0x578   : > { %703 = vst.msk [vmem:[#allocation4 + $0x8] sm:$0xff] %vm330_vm2, %v702_v37 }
 0x579   : > { %v888_v42 = vpop.f32.mrb[4].mxu0 }
 0x57a   : > { %v892_v43 = vadd.f32 %v888_v42, %v815_v39  ;;  %v1388_v44 = vpop.f32.mrb[5].mxu0  ;;  %1088 = sbr.rel (%p1337_p7) target bundleno = 1606 (0x646), region = 52 }
 0x57c   : > { %893 = vst.msk [vmem:[#allocation4 + $0x10] sm:$0xff] %vm330_vm2, %v892_v43 }
 0x57d   : > { %v1078_v46 = vpop.f32.mrb[6].mxu0 }
 0x57e   : > { %v1082_v47 = vadd.f32 %v1078_v46, %v1005_v45  ;;  %v1398_v48 = vpop.f32.mrb[7].mxu0 }
 0x57f   : > { %v1101_v58 = vld [vmem:[#allocation4 + $0x8] sm:$0xff] (!%p1337_p7) }
 0x580   : > { %1083 = vst.msk [vmem:[#allocation4 + $0x18] sm:$0xff] %vm330_vm2, %v1082_v47 }
 0x583   : > { %v1116_v63 = vld [vmem:[#allocation4 + $0x10] sm:$0xff] }
 0x587   : > { %v1131_v60 = vld [vmem:[#allocation4 + $0x18] sm:$0xff] }
 0x5c5   : > { %v1105_v59 = vpop.permute.xlu0 %1104 }
 0x5c6   : > { %v1107_v61 = vmul.f32 %v1105_v59, %v1101_v58 }
 0x5c8   : > { %1109 = vrot.lane.b32.xlu0 %v1107_v61, %s1813_s27 }
 0x5cd   : > { %v1135_v62 = vpop.permute.xlu1 %1134 }
 0x5ce   : > { %v1137_v0 = vmul.f32 %v1135_v62, %v1131_v60  ;;  %v1120_v2 = vpop.permute.xlu0 %1119 }
 0x5cf   : > { %v1122_v3 = vmul.f32 %v1120_v2, %v1116_v63 }
 0x5d0   : > { %1139 = vrot.lane.b32.xlu0 %v1137_v0, %s1815_s10 }
 0x5d1   : > { %v1095_v5 = vpop.permute.xlu1 %1094  ;;  %1124 = vrot.lane.b32.xlu1 %v1122_v3, %s1814_s19 }
 0x5d2   : > { %v1097_v6 = vmul.f32 %v1095_v5, %v1091_v1 }
 0x5d4   : > { %1098 = vst.msk [vmem:[%s2153_s7] sm:$0xff] %vm330_vm2, %v1097_v6 }
 0x63a   : > { %v1110_v7 = vpop.permute.xlu0 %1109 }
 0x63b   : > { %1113 = vst.msk [vmem:[%s2153_s7] sm:$0xff] %vm1112_vm5, %v1110_v7 }
 0x642   : > { %v1140_v9 = vpop.permute.xlu0 %1139 }
 0x643   : > { %v1125_v8 = vpop.permute.xlu1 %1124 }
 0x644   : > { %1128 = vst.msk [vmem:[%s2153_s7] sm:$0xff] %vm1127_vm6, %v1125_v8 }
 0x645   : > { %1143 = vst.msk [vmem:[%s2153_s7] sm:$0xff] %vm1142_vm7, %v1140_v9 }
 0x646 PF: > { %s2405_s25 = sld [smem:[#allocation20_spill]]  ;;  %s2406_s15 = sld [smem:[#allocation19_spill]] }
 0x647   : > { %s2407_s18 = sld [smem:[#allocation28_spill]]  ;;  %s1161_s16 = sshll.u32 %s2153_s7, 4  ;;  %s2250_s16 = int_to_ptr.vmem [resolvable:$true] %s1161_s16 }
 0x648   : > { %s2408_s11 = sld [smem:[#allocation32_spill]]  ;;  %s1145_s8 = scalar_lea.sflag [#allocation7], %s2133_s30 }
 0x649   : > { %s1657_s9 = scalar_lea.vmem %s2250_s16, 128  ;;  %s1816_s6 = smov [#allocation11]  }
 0x64a   : > { %p1658_p9 = scmp.ne.s32.totalorder %s2250_s16, %s1657_s9  ;;  %s1661_s29 = sshll.u32 %s1816_s6, 4  ;;  %s1662_s29 = int_to_ptr.vmem [resolvable:$false] %s1661_s29 }
 0x64b   : > { %s1663_s7 = scalar_lea.vmem %s1662_s29, 256  ;;  %p1664_p1 = scmp.lt.s32.totalorder %s2250_s16, %s1662_s29 }
 0x64c   : > { %s1339_s4 = sshll.u32 %s2405_s25, 2  ;;  %p1665_p13 = scmp.lt.s32.totalorder %s1663_s7, %s1657_s9 }
 0x64d   : > { %s1157_s3 = sadd.s32 %s2406_s15, %s1339_s4  ;;  %p2409_p3 = scmp.ne.s32.totalorder %s2407_s18, 0 }
 0x64e   : > { %s1340_s20 = sshll.u32 %s1157_s3, 7  ;;  %p1666_p12 = por %p1665_p13, %p1664_p1 }
 0x64f   : > { %s1159_s5 = scalar_lea.hbm %s2408_s11, %s1340_s20  ;;  %p1659_p10 = pnand %p1658_p9, %p2409_p3 }
 0x651   : > { %p1660_p11 = pneg %p1659_p10 }
 0x653   : > { %p1667_p6 = pnand %p1666_p12, %p1660_p11 }
 0x655   : > { %1670 = shalt.err (!%p1667_p6)
}
 0x656   : > { %s1671_s27 = scalar_lea.hbm %s1159_s5, 128  ;;  %s1675_s10 = scalar_lea.hbm %s2408_s11, 1024 }
 0x657   : > { %p1672_p4 = scmp.ne.s32.totalorder %s1159_s5, %s1671_s27  ;;  %p1676_p8 = scmp.lt.u32.totalorder %s1159_s5, %s2408_s11 }
 0x658   : > { %p1677_p0 = scmp.lt.u32.totalorder %s1675_s10, %s1671_s27  ;;  %p1679_p9 = scmp.lt.u32.totalorder %s1671_s27, %s1159_s5 }
 0x659   : > { %p1673_p2 = pnand %p1672_p4, %p2409_p3 }
 0x65a   : > { %p1678_p7 = por %p1677_p0, %p1676_p8 }
 0x65b   : > { %p1674_p5 = pneg %p1673_p2 }
 0x65c   : > { %p1680_p10 = por %p1679_p9, %p1678_p7 }
 0x65e   : > { %p1681_p11 = pnand %p1680_p10, %p1674_p5 }
 0x660   : > { %1684 = shalt.err (!%p1681_p11)
}
 0x661   : > { %1405 = dma.vmem_to_hbm [thread:$0]  (%p2409_p3), %s2250_s16, 128, %s1159_s5, %s1145_s8  }
 0x662 PF: > { %s2410_s4 = sld [smem:[#allocation16_spill]]  ;;  %s2411_s3 = sld [smem:[#allocation30_spill]] }
 0x663   : > { %p1422_p1 = scmp.ge.s32.totalorder %s1799_s24, 2 }
 0x668   : > { %s1173_s20 = sand.u32 1, %s2410_s4   ;;  %p2412_p13 = scmp.ne.s32.totalorder %s2411_s3, 0 }
 0x669   : > { %s1174_s12 = scalar_lea.sflag [#allocation7], %s1173_s20 }
 0x66a   : > { %p1418_p12 = pnand %p1422_p1, %p2412_p13 }
 0x66c   : > { %1746 = dma.done.wait (!%p1418_p12), %s1174_s12, 128  }
 0x66d   : > { %1748 = vsyncadd (!%p1418_p12), %s1174_s12, 4294967168  ;;  %s22_s24 = sadd.s32 1, %s1799_s24   ;;  %s2414_s12 = sld [smem:[#allocation15_spill]] }
 0x66e   : > { %p2277_p6 = scmp.ge.s32.totalorder %s22_s24, 34   ;;  %s2415_s15 = sld [smem:[#allocation17_spill]] }
 0x66f   : > { %s2416_s18 = smov %s2049_s13  ;;  %s2417_s5 = sld [smem:[#allocation26_spill]] }
 0x670   : > { %s2418_s8 = sld [smem:[#allocation29_spill]]  ;;  %s2419_s13 = smov %s1759_s14 }
 0x671   : > { %s2420_s14 = smov %s2054_s28  ;;  %s2421_s16 = smov %s1771_s17 }
 0x672   : > { %s2422_s17 = smov %s2416_s18  ;;  %s2423_s18 = smov %s1787_s21 }
 0x673   : > { %s2424_s19 = smov %s1791_s22  ;;  %s2425_s20 = smov %s1795_s23 }
 0x674   : > { %s2426_s21 = smov %s2430_s26  ;;  %21 = sbr.rel (!%p2277_p6) target bundleno = 15 (0xf), region = 118 }
 0x675   : > { %s2427_s22 = smov %s2417_s5 }
 0x676   : > { %s2428_s23 = smov %s2418_s8 }
 0x67b   :  { %1179 = vsyncpa [#allocation6], 1 }
 0x67c   :  { %1181 = vsyncpa [#allocation6 + $0x1], 1 }
 0x67d   :  { %1182 = vsyncpa [#allocation9], 1 }
 0x67e   :  { %1184 = vsyncpa [#allocation9 + $0x1], 1 }
 0x67f   :  { %1185 = vsyncpa [#allocation7], 1 }
 0x680   :  { %1187 = vsyncpa [#allocation7 + $0x1], 1 }

</bundles_post_ra>
